<compile_context>
chip_gen: v7x
topology: tpu7x:2x2x1
jax: 0.10.0
libtpu: 0.0.40
codegen_flags: <defaults>
</compile_context>

<pallas_src>
import functools
import math

import jax
import jax.numpy as jnp
from jax import lax
from jax.experimental import pallas as pl
from jax.experimental.pallas import tpu as pltpu


def _mha_kernel(x_ref, a_ref, gamma_ref, beta_ref,
                wqkv_ref, bqkv_ref, wproj_ref, bproj_ref,
                out_ref, qkv_ref, h_ref, vaug_ref,
                *, num_heads, num_groups, eps, tq, exp_dtype):
    x = x_ref[0]                               # (C, T) f32
    C, T = x.shape
    gs = C // num_groups
    hc = C // num_heads
    n_qt = T // tq
    cnt = float(gs * T)
    A = a_ref[...]                             # (G, C) one-hot group membership

    # ---- GroupNorm: lane (XLU) reductions + tiny (G,C) group dots, two-pass
    #      (centered) variance; epilogue folded into a single mul+add+cast. ----
    s = jnp.sum(x, axis=1, keepdims=True)                                  # (C, 1)
    mean_g = jnp.dot(A, s, preferred_element_type=jnp.float32) / cnt       # (G, 1)
    mean_c = lax.dot_general(A, mean_g, (((0,), (0,)), ((), ())),
                             preferred_element_type=jnp.float32)           # (C, 1)
    xc = x - mean_c
    ss = jnp.sum(xc * xc, axis=1, keepdims=True)                           # (C, 1)
    var_g = jnp.dot(A, ss, preferred_element_type=jnp.float32) / cnt       # (G, 1)
    inv_std_g = lax.rsqrt(var_g + eps)                                     # (G, 1)
    inv_std_c = lax.dot_general(A, inv_std_g, (((0,), (0,)), ((), ())),
                                preferred_element_type=jnp.float32)        # (C, 1)
    scale_c = inv_std_c * gamma_ref[...]
    xn = (xc * scale_c + beta_ref[...]).astype(jnp.bfloat16)

    # ---- qkv 1x1 conv (attention scale already folded into the q rows of the
    #      weights/bias). bf16 operands, f32 MXU accumulation, bf16 scratch. ----
    qkv_ref[...] = (jnp.dot(wqkv_ref[...], xn,
                            preferred_element_type=jnp.float32)
                    + bqkv_ref[...]).astype(jnp.bfloat16)

    # ones row of the augmented-V operand (written once per grid step); the
    # softmax row-sums then come out of the PV matmul as the last output row.
    vaug_ref[hc:hc + 1, :] = jnp.ones((1, T), jnp.bfloat16)

    @pl.loop(0, num_heads)
    def _head(h):
        base = h * (3 * hc)                    # matches reshape(b*heads, 3*hc, T)
        # stage this head's V next to the ones row (one aligned copy per head)
        vaug_ref[0:hc, :] = qkv_ref[pl.ds(pl.multiple_of(base + 2 * hc, 16), hc), :]

        @pl.loop(0, n_qt)
        def _qtile(t):
            col = pl.multiple_of(t * tq, 128)
            qb = qkv_ref[pl.ds(pl.multiple_of(base, 16), hc), pl.ds(col, tq)]
            kb = qkv_ref[pl.ds(pl.multiple_of(base + hc, 16), hc), :]
            # key-major logits: logits[s, t] = sum_c k[c, s] * q[c, t]
            logits = lax.dot_general(kb, qb, (((0,), (0,)), ((), ())),
                                     preferred_element_type=jnp.float32)   # (T, tq)
            m = jnp.max(logits, axis=0, keepdims=True)                     # (1, tq)
            p = jnp.exp((logits - m).astype(exp_dtype)).astype(jnp.bfloat16)
            # PV in native MXU orientation (contracts p's leading axis);
            # last output row holds the softmax denominators (lane-dense).
            o_aug = lax.dot_general(vaug_ref[...], p, (((1,), (0,)), ((), ())),
                                    preferred_element_type=jnp.float32)    # (hc+1, tq)
            inv = pl.reciprocal(o_aug[hc:hc + 1, :], approx=True)          # (1, tq)
            h_ref[pl.ds(pl.multiple_of(h * hc, 16), hc), pl.ds(col, tq)] = (
                o_aug[:hc, :] * inv).astype(jnp.bfloat16)

    # ---- single K=C proj matmul + bias + residual, written straight to out ----
    out_ref[0] = (jnp.dot(wproj_ref[...], h_ref[...],
                          preferred_element_type=jnp.float32)
                  + bproj_ref[...] + x_ref[0]).astype(out_ref.dtype)


def _pick_query_tile(T):
    for cand in (512, 256, 128):
        if T % cand == 0:
            return cand
    return T


def _vmem_limit_bytes():
    cap = None
    try:
        cap = pltpu.get_tpu_info().vmem_capacity_bytes
    except Exception:
        cap = None
    if not cap:
        kind = jax.devices()[0].device_kind.lower()
        cap = (64 if ("v7" in kind or "7x" in kind) else 128) * 1024 * 1024
    return int(cap * 0.8)


def multi_head_attention_pallas(x, params, *, num_heads, num_groups=32, eps=1e-5):
    b, c = x.shape[:2]
    spatial = x.shape[2:]
    T = math.prod(spatial)
    assert c % num_groups == 0
    assert c % num_heads == 0
    hc = c // num_heads
    assert hc % 16 == 0, "head channels must be a multiple of 16 (bf16 sublane packing)"
    assert T % 128 == 0, "flattened spatial size must be a multiple of 128 (lane-dense)"
    # TODO(synk): pad T to a multiple of 128 with masked keys instead of asserting.

    tq = _pick_query_tile(T)
    x2 = x.reshape(b, c, T)

    # one-hot (G, C) group-membership matrix (contiguous channel groups)
    A = (jnp.arange(c)[None, :] // (c // num_groups)
         == jnp.arange(num_groups)[:, None]).astype(jnp.float32)

    gamma = params["gamma"].reshape(c, 1).astype(jnp.float32)
    beta = params["beta"].reshape(c, 1).astype(jnp.float32)

    # Fold the attention scale (1/sqrt(hc) = q-scale * k-scale) into the q rows
    # of the qkv conv weight/bias (one-time weight transform, no in-kernel pass).
    scale = 1.0 / float(hc) ** 0.5
    row_in_head = jnp.arange(3 * c) % (3 * hc)
    row_scale = jnp.where(row_in_head < hc, scale, 1.0).astype(jnp.float32)
    wqkv = (params["wqkv"] * row_scale[:, None]).astype(jnp.bfloat16)     # (3c, c)
    bqkv = (params["bqkv"] * row_scale).reshape(3 * c, 1).astype(jnp.float32)
    wproj = params["wproj"].astype(jnp.bfloat16)                          # (c, c)
    bproj = params["bproj"].reshape(c, 1).astype(jnp.float32)

    kind = jax.devices()[0].device_kind.lower()
    use_bf16_exp = any(t in kind for t in ("v6", "v7", "7x"))
    exp_dtype = jnp.bfloat16 if use_bf16_exp else jnp.float32  # v5e: no bf16 EUP

    kernel = functools.partial(_mha_kernel, num_heads=num_heads,
                               num_groups=num_groups, eps=eps, tq=tq,
                               exp_dtype=exp_dtype)

    def full(shp):
        return pl.BlockSpec(shp, lambda i, _n=len(shp): (0,) * _n)

    out = pl.pallas_call(
        kernel,
        out_shape=jax.ShapeDtypeStruct((b, c, T), x.dtype),
        grid=(b,),
        in_specs=[
            pl.BlockSpec((1, c, T), lambda i: (i, 0, 0)),   # x, one batch per step
            full(A.shape),
            full(gamma.shape),
            full(beta.shape),
            full(wqkv.shape),
            full(bqkv.shape),
            full(wproj.shape),
            full(bproj.shape),
        ],
        out_specs=pl.BlockSpec((1, c, T), lambda i: (i, 0, 0)),
        scratch_shapes=[
            pltpu.VMEM((3 * c, T), jnp.bfloat16),    # qkv (scale pre-folded into q)
            pltpu.VMEM((c, T), jnp.bfloat16),        # per-head attention outputs
            pltpu.VMEM((hc + 1, T), jnp.bfloat16),   # V augmented with a ones row
        ],
        compiler_params=pltpu.CompilerParams(
            dimension_semantics=("parallel",),       # batch axis feeds both TCs
            vmem_limit_bytes=_vmem_limit_bytes(),
        ),
    )(x2, A, gamma, beta, wqkv, bqkv, wproj, bproj)
    return out.reshape(b, c, *spatial)


def reference(x, params, *, num_heads, num_groups=32, eps=1e-5):
    """Pure-JAX (f32) reference mirroring the PyTorch forward."""
    b, c = x.shape[:2]
    T = math.prod(x.shape[2:])
    xf = x.reshape(b, c, T)
    xg = xf.reshape(b, num_groups, (c // num_groups) * T)
    mean = xg.mean(axis=-1, keepdims=True)
    var = ((xg - mean) ** 2).mean(axis=-1, keepdims=True)
    xn = ((xg - mean) / jnp.sqrt(var + eps)).reshape(b, c, T)
    xn = xn * params["gamma"].reshape(1, c, 1) + params["beta"].reshape(1, c, 1)
    qkv = jnp.einsum("oc,bct->bot", params["wqkv"], xn) \
        + params["bqkv"].reshape(1, 3 * c, 1)
    qkv = qkv.reshape(b * num_heads, -1, T)
    hc = c // num_heads
    q, k, v = jnp.split(qkv, 3, axis=1)
    scale = 1.0 / hc ** 0.25
    w = jnp.einsum("bct,bcs->bts", q * scale, k * scale)
    w = jax.nn.softmax(w, axis=-1)
    h = jnp.einsum("bts,bcs->bct", w, v).reshape(b, c, T)
    h = jnp.einsum("oc,bct->bot", params["wproj"], h) \
        + params["bproj"].reshape(1, c, 1)
    return (h + xf).reshape(x.shape)


if __name__ == "__main__":
    key = jax.random.PRNGKey(0)
    b, c, H, W = 2, 64, 16, 16        # T = 256 -> lane-dense (multiple of 128)
    num_heads = 2                     # hc = 32 (multiple of 16)
    k_x, k_qw, k_qb, k_pw, k_pb = jax.random.split(key, 5)
    x = jax.random.normal(k_x, (b, c, H, W), jnp.float32)

    kq = 1.0 / math.sqrt(c)
    params = {
        # GroupNorm affine params (PyTorch default init: weight=1, bias=0)
        "gamma": jnp.ones((c,), jnp.float32),
        "beta": jnp.zeros((c,), jnp.float32),
        # qkv 1x1 conv: Conv1d(c, 3c, 1)
        "wqkv": jax.random.uniform(k_qw, (3 * c, c), jnp.float32, -kq, kq),
        "bqkv": jax.random.uniform(k_qb, (3 * c,), jnp.float32, -kq, kq),
        # proj 1x1 conv: Conv1d(c, c, 1).
        # NOTE: the PyTorch module's init_weights() zero-inits proj (which makes
        # the forward a no-op residual); random weights exercise the hot path.
        "wproj": jax.random.uniform(k_pw, (c, c), jnp.float32, -kq, kq),
        "bproj": jax.random.uniform(k_pb, (c,), jnp.float32, -kq, kq),
    }

    out = multi_head_attention_pallas(x, params, num_heads=num_heads)
    out = jax.block_until_ready(out)

    ref = reference(x, params, num_heads=num_heads)
    assert out.shape == x.shape
    max_err = float(jnp.max(jnp.abs(out - ref)))
    # bf16 MXU operands / bf16 softmax probs with f32 accumulation vs. f32 ref.
    assert jnp.allclose(out, ref, atol=5e-2, rtol=5e-2), f"max abs err = {max_err}"
    print("KERNEL_OK")
</pallas_src>

<mosaic_0001>
module attributes {stable_mosaic.version = 11 : i64} {
  func.func @_mha_kernel(%arg0: i32, %arg1: memref<1x64x256xf32, #tpu.memory_space<vmem>>, %arg2: memref<32x64xf32, #tpu.memory_space<vmem>>, %arg3: memref<64x1xf32, #tpu.memory_space<vmem>>, %arg4: memref<64x1xf32, #tpu.memory_space<vmem>>, %arg5: memref<192x64xbf16, #tpu.memory_space<vmem>>, %arg6: memref<192x1xf32, #tpu.memory_space<vmem>>, %arg7: memref<64x64xbf16, #tpu.memory_space<vmem>>, %arg8: memref<64x1xf32, #tpu.memory_space<vmem>>, %arg9: memref<1x64x256xf32, #tpu.memory_space<vmem>>, %arg10: memref<192x256xbf16, #tpu.memory_space<vmem>>, %arg11: memref<64x256xbf16, #tpu.memory_space<vmem>>, %arg12: memref<33x256xbf16, #tpu.memory_space<vmem>>) attributes {dimension_semantics = [#tpu.dimension_semantics<parallel>], iteration_bounds = array<i64: 2>, scalar_prefetch = 0 : i64, scratch_operands = 3 : i64, tpu.core_type = #tpu.core_type<tc>, window_params = [{transform_indices = @transform_0, window_bounds = array<i64: 1, 64, 256>}, {pipeline_mode = #tpu.pipeline_mode<synchronous>, transform_indices = @transform_1, window_bounds = array<i64: 32, 64>}, {pipeline_mode = #tpu.pipeline_mode<synchronous>, transform_indices = @transform_2, window_bounds = array<i64: 64, 1>}, {pipeline_mode = #tpu.pipeline_mode<synchronous>, transform_indices = @transform_3, window_bounds = array<i64: 64, 1>}, {pipeline_mode = #tpu.pipeline_mode<synchronous>, transform_indices = @transform_4, window_bounds = array<i64: 192, 64>}, {pipeline_mode = #tpu.pipeline_mode<synchronous>, transform_indices = @transform_5, window_bounds = array<i64: 192, 1>}, {pipeline_mode = #tpu.pipeline_mode<synchronous>, transform_indices = @transform_6, window_bounds = array<i64: 64, 64>}, {pipeline_mode = #tpu.pipeline_mode<synchronous>, transform_indices = @transform_7, window_bounds = array<i64: 64, 1>}, {transform_indices = @transform_8, window_bounds = array<i64: 1, 64, 256>}]} {
    %c0 = arith.constant 0 : index
    %c0_0 = arith.constant 0 : index
    %c0_1 = arith.constant 0 : index
    %0 = vector.load %arg1[%c0, %c0_0, %c0_1] : memref<1x64x256xf32, #tpu.memory_space<vmem>>, vector<1x64x256xf32>
    %1 = vector.shape_cast %0 : vector<1x64x256xf32> to vector<64x256xf32>
    %c0_2 = arith.constant 0 : index
    %c0_3 = arith.constant 0 : index
    %2 = vector.load %arg2[%c0_2, %c0_3] : memref<32x64xf32, #tpu.memory_space<vmem>>, vector<32x64xf32>
    %cst = arith.constant dense<0.000000e+00> : vector<64xf32>
    %3 = vector.multi_reduction <add>, %1, %cst [1] : vector<64x256xf32> to vector<64xf32>
    %4 = vector.shape_cast %3 : vector<64xf32> to vector<64x1xf32>
    %cst_4 = arith.constant dense<0.000000e+00> : vector<32x1xf32>
    %5 = tpu.matmul %2, %4, %cst_4 {dimension_numbers = #tpu.dot_dimension_numbers<[1], [0], [0], [1], [0, 0, 1, 1], [], []>} : vector<32x64xf32>, vector<64x1xf32>, vector<32x1xf32> -> vector<32x1xf32>
    %cst_5 = arith.constant 5.120000e+02 : f32
    %6 = vector.broadcast %cst_5 : f32 to vector<32x1xf32>
    %7 = arith.divf %5, %6 : vector<32x1xf32>
    %cst_6 = arith.constant dense<0.000000e+00> : vector<64x1xf32>
    %8 = tpu.matmul %2, %7, %cst_6 {dimension_numbers = #tpu.dot_dimension_numbers<[0], [0], [1], [1], [0, 1, 1, 1], [], []>} : vector<32x64xf32>, vector<32x1xf32>, vector<64x1xf32> -> vector<64x1xf32>
    %9 = vector.broadcast %8 : vector<64x1xf32> to vector<64x256xf32>
    %10 = arith.subf %1, %9 : vector<64x256xf32>
    %11 = arith.mulf %10, %10 : vector<64x256xf32>
    %cst_7 = arith.constant dense<0.000000e+00> : vector<64xf32>
    %12 = vector.multi_reduction <add>, %11, %cst_7 [1] : vector<64x256xf32> to vector<64xf32>
    %13 = vector.shape_cast %12 : vector<64xf32> to vector<64x1xf32>
    %cst_8 = arith.constant dense<0.000000e+00> : vector<32x1xf32>
    %14 = tpu.matmul %2, %13, %cst_8 {dimension_numbers = #tpu.dot_dimension_numbers<[1], [0], [0], [1], [0, 0, 1, 1], [], []>} : vector<32x64xf32>, vector<64x1xf32>, vector<32x1xf32> -> vector<32x1xf32>
    %cst_9 = arith.constant 5.120000e+02 : f32
    %15 = vector.broadcast %cst_9 : f32 to vector<32x1xf32>
    %16 = arith.divf %14, %15 : vector<32x1xf32>
    %cst_10 = arith.constant 9.99999974E-6 : f32
    %17 = vector.broadcast %cst_10 : f32 to vector<32x1xf32>
    %18 = arith.addf %16, %17 : vector<32x1xf32>
    %19 = math.rsqrt %18 : vector<32x1xf32>
    %cst_11 = arith.constant dense<0.000000e+00> : vector<64x1xf32>
    %20 = tpu.matmul %2, %19, %cst_11 {dimension_numbers = #tpu.dot_dimension_numbers<[0], [0], [1], [1], [0, 1, 1, 1], [], []>} : vector<32x64xf32>, vector<32x1xf32>, vector<64x1xf32> -> vector<64x1xf32>
    %c0_12 = arith.constant 0 : index
    %c0_13 = arith.constant 0 : index
    %21 = vector.load %arg3[%c0_12, %c0_13] : memref<64x1xf32, #tpu.memory_space<vmem>>, vector<64x1xf32>
    %22 = arith.mulf %20, %21 : vector<64x1xf32>
    %23 = vector.broadcast %22 : vector<64x1xf32> to vector<64x256xf32>
    %24 = arith.mulf %10, %23 : vector<64x256xf32>
    %c0_14 = arith.constant 0 : index
    %c0_15 = arith.constant 0 : index
    %25 = vector.load %arg4[%c0_14, %c0_15] : memref<64x1xf32, #tpu.memory_space<vmem>>, vector<64x1xf32>
    %26 = vector.broadcast %25 : vector<64x1xf32> to vector<64x256xf32>
    %27 = arith.addf %24, %26 : vector<64x256xf32>
    %28 = arith.truncf %27 : vector<64x256xf32> to vector<64x256xbf16>
    %c0_16 = arith.constant 0 : index
    %c0_17 = arith.constant 0 : index
    %29 = vector.load %arg5[%c0_16, %c0_17] : memref<192x64xbf16, #tpu.memory_space<vmem>>, vector<192x64xbf16>
    %cst_18 = arith.constant dense<0.000000e+00> : vector<192x256xf32>
    %30 = tpu.matmul %29, %28, %cst_18 {dimension_numbers = #tpu.dot_dimension_numbers<[1], [0], [0], [1], [0, 0, 1, 1], [], []>} : vector<192x64xbf16>, vector<64x256xbf16>, vector<192x256xf32> -> vector<192x256xf32>
    %c0_19 = arith.constant 0 : index
    %c0_20 = arith.constant 0 : index
    %31 = vector.load %arg6[%c0_19, %c0_20] : memref<192x1xf32, #tpu.memory_space<vmem>>, vector<192x1xf32>
    %32 = vector.broadcast %31 : vector<192x1xf32> to vector<192x256xf32>
    %33 = arith.addf %30, %32 : vector<192x256xf32>
    %34 = arith.truncf %33 : vector<192x256xf32> to vector<192x256xbf16>
    %c0_21 = arith.constant 0 : index
    %c0_22 = arith.constant 0 : index
    %35 = vector.load %arg10[%c0_21, %c0_22] : memref<192x256xbf16, #tpu.memory_space<vmem>>, vector<192x256xbf16>
    tpu.vector_store %arg10[%c0_21, %c0_22], %34 {strides = array<i32>} : memref<192x256xbf16, #tpu.memory_space<vmem>>, vector<192x256xbf16>,
    %cst_23 = arith.constant 1.000000e+00 : bf16
    %36 = vector.broadcast %cst_23 : bf16 to vector<1x256xbf16>
    %c32 = arith.constant 32 : index
    %c0_24 = arith.constant 0 : index
    %37 = vector.load %arg12[%c32, %c0_24] : memref<33x256xbf16, #tpu.memory_space<vmem>>, vector<1x256xbf16>
    tpu.vector_store %arg12[%c32, %c0_24], %36 {strides = array<i32>} : memref<33x256xbf16, #tpu.memory_space<vmem>>, vector<1x256xbf16>,
    %c0_i32 = arith.constant 0 : i32
    %c2_i32 = arith.constant 2 : i32
    %38 = arith.addi %c0_i32, %c2_i32 : i32
    %c1_i32 = arith.constant 1 : i32
    scf.for %arg13 = %c0_i32 to %38 step %c1_i32  : i32 {
      %c1_i32_39 = arith.constant 1 : i32
      %51 = arith.muli %arg13, %c1_i32_39 : i32
      %c0_i32_40 = arith.constant 0 : i32
      %52 = arith.addi %c0_i32_40, %51 : i32
      %c96_i32 = arith.constant 96 : i32
      %53 = arith.muli %52, %c96_i32 : i32
      %c64_i32 = arith.constant 64 : i32
      %54 = arith.addi %53, %c64_i32 : i32
      %55 = tpu.assume_multiple %54, 16 : i32
      %56 = arith.index_cast %55 : i32 to index
      %c0_41 = arith.constant 0 : index
      %57 = vector.load %arg10[%56, %c0_41] : memref<192x256xbf16, #tpu.memory_space<vmem>>, vector<32x256xbf16>
      %c0_42 = arith.constant 0 : index
      %c0_43 = arith.constant 0 : index
      %58 = vector.load %arg12[%c0_42, %c0_43] : memref<33x256xbf16, #tpu.memory_space<vmem>>, vector<32x256xbf16>
      tpu.vector_store %arg12[%c0_42, %c0_43], %57 {strides = array<i32>} : memref<33x256xbf16, #tpu.memory_space<vmem>>, vector<32x256xbf16>,
      %c0_i32_44 = arith.constant 0 : i32
      %c1_i32_45 = arith.constant 1 : i32
      %59 = arith.muli %c0_i32_44, %c1_i32_45 : i32
      %c0_i32_46 = arith.constant 0 : i32
      %60 = arith.addi %c0_i32_46, %59 : i32
      %c256_i32 = arith.constant 256 : i32
      %61 = arith.muli %60, %c256_i32 : i32
      %62 = tpu.assume_multiple %61, 128 : i32
      %63 = tpu.assume_multiple %53, 16 : i32
      %64 = arith.index_cast %63 : i32 to index
      %65 = arith.index_cast %62 : i32 to index
      %66 = vector.load %arg10[%64, %65] : memref<192x256xbf16, #tpu.memory_space<vmem>>, vector<32x256xbf16>
      %c32_i32 = arith.constant 32 : i32
      %67 = arith.addi %53, %c32_i32 : i32
      %68 = tpu.assume_multiple %67, 16 : i32
      %69 = arith.index_cast %68 : i32 to index
      %c0_47 = arith.constant 0 : index
      %70 = vector.load %arg10[%69, %c0_47] : memref<192x256xbf16, #tpu.memory_space<vmem>>, vector<32x256xbf16>
      %cst_48 = arith.constant dense<0.000000e+00> : vector<256x256xf32>
      %71 = tpu.matmul %70, %66, %cst_48 {dimension_numbers = #tpu.dot_dimension_numbers<[0], [0], [1], [1], [0, 1, 1, 1], [], []>} : vector<32x256xbf16>, vector<32x256xbf16>, vector<256x256xf32> -> vector<256x256xf32>
      %cst_49 = arith.constant dense<0xFF800000> : vector<256xf32>
      %72 = vector.multi_reduction <maximumf>, %71, %cst_49 [0] : vector<256x256xf32> to vector<256xf32>
      %73 = vector.shape_cast %72 : vector<256xf32> to vector<1x256xf32>
      %74 = vector.broadcast %73 : vector<1x256xf32> to vector<256x256xf32>
      %75 = arith.subf %71, %74 : vector<256x256xf32>
      %76 = math.exp %75 : vector<256x256xf32>
      %77 = arith.truncf %76 : vector<256x256xf32> to vector<256x256xbf16>
      %c0_50 = arith.constant 0 : index
      %c0_51 = arith.constant 0 : index
      %78 = vector.load %arg12[%c0_50, %c0_51] : memref<33x256xbf16, #tpu.memory_space<vmem>>, vector<33x256xbf16>
      %cst_52 = arith.constant dense<0.000000e+00> : vector<33x256xf32>
      %79 = tpu.matmul %78, %77, %cst_52 {dimension_numbers = #tpu.dot_dimension_numbers<[1], [0], [0], [1], [0, 0, 1, 1], [], []>} : vector<33x256xbf16>, vector<256x256xbf16>, vector<33x256xf32> -> vector<33x256xf32>
      %80 = vector.extract_strided_slice %79 {offsets = [32, 0], sizes = [1, 256], strides = [1, 1]} : vector<33x256xf32> to vector<1x256xf32>
      %81 = tpu.reciprocal %80 {approx = true} : vector<1x256xf32> -> vector<1x256xf32>
      %82 = vector.extract_strided_slice %79 {offsets = [0, 0], sizes = [32, 256], strides = [1, 1]} : vector<33x256xf32> to vector<32x256xf32>
      %83 = vector.broadcast %81 : vector<1x256xf32> to vector<32x256xf32>
      %84 = arith.mulf %82, %83 : vector<32x256xf32>
      %85 = arith.truncf %84 : vector<32x256xf32> to vector<32x256xbf16>
      %c32_i32_53 = arith.constant 32 : i32
      %86 = arith.muli %52, %c32_i32_53 : i32
      %87 = tpu.assume_multiple %86, 16 : i32
      %88 = arith.index_cast %87 : i32 to index
      %89 = arith.index_cast %62 : i32 to index
      %90 = vector.load %arg11[%88, %89] : memref<64x256xbf16, #tpu.memory_space<vmem>>, vector<32x256xbf16>
      tpu.vector_store %arg11[%88, %89], %85 {strides = array<i32>} : memref<64x256xbf16, #tpu.memory_space<vmem>>, vector<32x256xbf16>,
      %c1_i32_54 = arith.constant 1 : i32
    }
    %c2_i32_25 = arith.constant 2 : i32
    %c0_26 = arith.constant 0 : index
    %c0_27 = arith.constant 0 : index
    %39 = vector.load %arg7[%c0_26, %c0_27] : memref<64x64xbf16, #tpu.memory_space<vmem>>, vector<64x64xbf16>
    %c0_28 = arith.constant 0 : index
    %c0_29 = arith.constant 0 : index
    %40 = vector.load %arg11[%c0_28, %c0_29] : memref<64x256xbf16, #tpu.memory_space<vmem>>, vector<64x256xbf16>
    %cst_30 = arith.constant dense<0.000000e+00> : vector<64x256xf32>
    %41 = tpu.matmul %39, %40, %cst_30 {dimension_numbers = #tpu.dot_dimension_numbers<[1], [0], [0], [1], [0, 0, 1, 1], [], []>} : vector<64x64xbf16>, vector<64x256xbf16>, vector<64x256xf32> -> vector<64x256xf32>
    %c0_31 = arith.constant 0 : index
    %c0_32 = arith.constant 0 : index
    %42 = vector.load %arg8[%c0_31, %c0_32] : memref<64x1xf32, #tpu.memory_space<vmem>>, vector<64x1xf32>
    %43 = vector.broadcast %42 : vector<64x1xf32> to vector<64x256xf32>
    %44 = arith.addf %41, %43 : vector<64x256xf32>
    %c0_33 = arith.constant 0 : index
    %c0_34 = arith.constant 0 : index
    %c0_35 = arith.constant 0 : index
    %45 = vector.load %arg1[%c0_33, %c0_34, %c0_35] : memref<1x64x256xf32, #tpu.memory_space<vmem>>, vector<1x64x256xf32>
    %46 = vector.shape_cast %45 : vector<1x64x256xf32> to vector<64x256xf32>
    %47 = arith.addf %44, %46 : vector<64x256xf32>
    %c0_36 = arith.constant 0 : index
    %c0_37 = arith.constant 0 : index
    %c0_38 = arith.constant 0 : index
    %48 = vector.load %arg9[%c0_36, %c0_37, %c0_38] : memref<1x64x256xf32, #tpu.memory_space<vmem>>, vector<1x64x256xf32>
    %49 = vector.shape_cast %48 : vector<1x64x256xf32> to vector<64x256xf32>
    %50 = vector.shape_cast %47 : vector<64x256xf32> to vector<1x64x256xf32>
    tpu.vector_store %arg9[%c0_36, %c0_37, %c0_38], %50 {strides = array<i32>} : memref<1x64x256xf32, #tpu.memory_space<vmem>>, vector<1x64x256xf32>,
    return
  }
  func.func @transform_0(%arg0: i32) -> (i32, i32, i32) {
    %c0_i32 = arith.constant 0 : i32
    %c0_i32_0 = arith.constant 0 : i32
    %c0_i32_1 = arith.constant 0 : i32
    return %arg0, %c0_i32, %c0_i32_0 : i32, i32, i32
  }
  func.func @transform_1(%arg0: i32) -> (i32, i32) {
    %c0_i32 = arith.constant 0 : i32
    %c0_i32_0 = arith.constant 0 : i32
    %c0_i32_1 = arith.constant 0 : i32
    return %c0_i32, %c0_i32_0 : i32, i32
  }
  func.func @transform_2(%arg0: i32) -> (i32, i32) {
    %c0_i32 = arith.constant 0 : i32
    %c0_i32_0 = arith.constant 0 : i32
    %c0_i32_1 = arith.constant 0 : i32
    return %c0_i32, %c0_i32_0 : i32, i32
  }
  func.func @transform_3(%arg0: i32) -> (i32, i32) {
    %c0_i32 = arith.constant 0 : i32
    %c0_i32_0 = arith.constant 0 : i32
    %c0_i32_1 = arith.constant 0 : i32
    return %c0_i32, %c0_i32_0 : i32, i32
  }
  func.func @transform_4(%arg0: i32) -> (i32, i32) {
    %c0_i32 = arith.constant 0 : i32
    %c0_i32_0 = arith.constant 0 : i32
    %c0_i32_1 = arith.constant 0 : i32
    return %c0_i32, %c0_i32_0 : i32, i32
  }
  func.func @transform_5(%arg0: i32) -> (i32, i32) {
    %c0_i32 = arith.constant 0 : i32
    %c0_i32_0 = arith.constant 0 : i32
    %c0_i32_1 = arith.constant 0 : i32
    return %c0_i32, %c0_i32_0 : i32, i32
  }
  func.func @transform_6(%arg0: i32) -> (i32, i32) {
    %c0_i32 = arith.constant 0 : i32
    %c0_i32_0 = arith.constant 0 : i32
    %c0_i32_1 = arith.constant 0 : i32
    return %c0_i32, %c0_i32_0 : i32, i32
  }
  func.func @transform_7(%arg0: i32) -> (i32, i32) {
    %c0_i32 = arith.constant 0 : i32
    %c0_i32_0 = arith.constant 0 : i32
    %c0_i32_1 = arith.constant 0 : i32
    return %c0_i32, %c0_i32_0 : i32, i32
  }
  func.func @transform_8(%arg0: i32) -> (i32, i32, i32) {
    %c0_i32 = arith.constant 0 : i32
    %c0_i32_0 = arith.constant 0 : i32
    %c0_i32_1 = arith.constant 0 : i32
    return %arg0, %c0_i32, %c0_i32_0 : i32, i32, i32
  }
}

</mosaic_0001>

<bundles_post_ra>
// kernel: tpu_custom_call.1
= control target key start
LH: loop header
LB: loop body
LE: loop exit
PB: predicated region body
PF: predicated region fallthrough
CT: control target
= control target key end

     0   :  { %s5077_s0 = inlined_call_operand.hbm [shape: f32[2,64,256], index: 0, kind: input, shape index: {}]   ;;  %s5078_s1 = inlined_call_operand.hbm [shape: f32[32,64], index: 1, kind: input, shape index: {}]   ;;  %s5079_s2 = inlined_call_operand.hbm [shape: f32[64,1], index: 2, kind: input, shape index: {}]   ;;  %s5080_s3 = inlined_call_operand.hbm [shape: f32[64,1], index: 3, kind: input, shape index: {}]   ;;  %s5081_s4 = inlined_call_operand.hbm [shape: bf16[192,64], index: 4, kind: input, shape index: {}]   ;;  %s5082_s5 = inlined_call_operand.hbm [shape: f32[192,1], index: 5, kind: input, shape index: {}]   ;;  %s5083_s6 = inlined_call_operand.hbm [shape: bf16[64,64], index: 6, kind: input, shape index: {}]   ;;  %s5084_s7 = inlined_call_operand.hbm [shape: f32[64,1], index: 7, kind: input, shape index: {}]   ;;  %s5085_s8 = inlined_call_operand.hbm [shape: f32[2,64,256], index: 8, kind: output, shape index: {}]  }
   0x1   :  { %5141 = sst [smem:[#allocation54_spill]] %s5078_s1 }
   0x2   :  { %5142 = sst [smem:[#allocation55_spill]] %s5079_s2 }
   0x3   :  { %13 = vsyncpa [#allocation6], 0 }
   0x4   :  { %15 = vsyncpa [#allocation6 + $0x1], 0 }
   0x5   :  { %16 = vsyncpa [#allocation9], 0 }
   0x6   :  { %17 = vsyncpa [#allocation12], 0 }
   0x7   :  { %18 = vsyncpa [#allocation15], 0 }
   0x8   :  { %19 = vsyncpa [#allocation18], 0 }
   0x9   :  { %20 = vsyncpa [#allocation7], 0 }
   0xa   :  { %22 = vsyncpa [#allocation7 + $0x1], 0  ;;  %s3809_s27 = smov 0   ;;  %s3811_s28 = smov 0  }
   0xb   :  { %s3813_s29 = smov 0   ;;  %s3815_s30 = smov 0  }
   0xc LB: > { %s3745_s9 = smov [#allocation8]   ;;  %s3830_s11 = sadd.s32 4294967295, %s3739_s30   ;;  %s3739_s30 = sphi %s3815_s30, %s5285_s30   ;;  %s3735_s29 = sphi %s3813_s29, %s5284_s29   ;;  %s3731_s28 = sphi %s3811_s28, %s5283_s28   ;;  %s3727_s27 = sphi %s3809_s27, %s5282_s27  }
   0xd   : > { %s244_s10 = sshll.u32 %s3745_s9, 4  ;;  %p2799_p0 = scmp.ge.s32.totalorder %s3739_s30, 1  ;;  %s3835_s10 = int_to_ptr.vmem [resolvable:$true] %s244_s10 }
   0xe   : > { %p5086_p1 = scmp.eq.s32.totalorder %s3830_s11, 0  ;;  %p232_p2 = scmp.lt.s32.totalorder %s3739_s30, 3 }
   0xf   : > { %s3746_s13 = smov [#allocation11]   ;;  %s3747_s16 = smov [#allocation14]  }
  0x10   : > { %p3837_p3 = pnand %p2799_p0, %p232_p2  ;;  %s270_s14 = sshll.u32 %s3746_s13, 4  ;;  %s3850_s14 = int_to_ptr.vmem [resolvable:$true] %s270_s14 }
  0x11   : > { %s296_s17 = sshll.u32 %s3747_s16, 4  ;;  %s5145_s1 = sld [smem:[#allocation54_spill]]  ;;  %s3852_s17 = int_to_ptr.vmem [resolvable:$true] %s296_s17 }
  0x12   : > { %s5143_s12 = scalar_select %p3837_p3, 1, 0 }
  0x13   : > { %p3151_p5 = pneg %p3837_p3 }
  0x15   : > { %p3846_p6 = pnand %p3151_p5, %p5086_p1 }
  0x17   : > { %s3427_s20 = scalar_lea.hbm %s5145_s1, 512  ;;  %p3862_p8 = pneg %p3846_p6 }
  0x18   : > { %p3428_p7 = scmp.ne.s32.totalorder %s5145_s1, %s3427_s20  ;;  %p3434_p11 = scmp.lt.u32.totalorder %s3427_s20, %s5145_s1 }
  0x1a   : > { %p3430_p9 = pnand %p3862_p8, %p3428_p7 }
  0x1c   : > { %p3431_p10 = pneg %p3430_p9 }
  0x1e   : > { %p3436_p12 = pnand %p3434_p11, %p3431_p10 }
  0x20   : > { %3439 = shalt.err (!%p3436_p12)
}
  0x21   : > { %s3440_s26 = scalar_lea.vmem %s3835_s10, 512  ;;  %p3448_p5 = scmp.lt.s32.totalorder %s3835_s10, %s3835_s10 }
  0x22   : > { %p3441_p13 = scmp.ne.s32.totalorder %s3835_s10, %s3440_s26  ;;  %p3449_p4 = scmp.lt.s32.totalorder %s3440_s26, %s3440_s26 }
  0x24   : > { %p3443_p0 = pnand %p3441_p13, %p3862_p8  ;;  %p3450_p7 = por %p3449_p4, %p3448_p5 }
  0x26   : > { %p3444_p2 = pneg %p3443_p0 }
  0x28   : > { %p3451_p9 = pnand %p3450_p7, %p3444_p2 }
  0x2a   : > { %3454 = shalt.err (!%p3451_p9)
}
  0x2b   : > { %s5088_s9 = smov 128   ;;  %s5089_s13 = smov 8  }
  0x2c   : > { %3154 = dma.hbm_to_vmem [thread:$0]  (!%p3846_p6), %s5145_s1, 512, %s3835_s10, [#allocation9], %s5088_s9, %s5088_s9, %s5089_s13  }
  0x2d   : > { %s3455_s21 = scalar_lea.hbm %s5080_s3, 1024 }
  0x2e   : > { %p3456_p4 = scmp.ne.s32.totalorder %s5080_s3, %s3455_s21  ;;  %p3462_p12 = scmp.lt.u32.totalorder %s3455_s21, %s5080_s3 }
  0x30   : > { %p3458_p10 = pnand %p3456_p4, %p3862_p8 }
  0x32   : > { %p3459_p11 = pneg %p3458_p10 }
  0x34   : > { %p3464_p13 = pnand %p3462_p12, %p3459_p11 }
  0x36   : > { %3467 = shalt.err (!%p3464_p13)
}
  0x37   : > { %s3468_s10 = scalar_lea.vmem %s3850_s14, 1024  ;;  %p3476_p7 = scmp.lt.s32.totalorder %s3850_s14, %s3850_s14 }
  0x38   : > { %p3469_p0 = scmp.ne.s32.totalorder %s3850_s14, %s3468_s10  ;;  %p3477_p9 = scmp.lt.s32.totalorder %s3468_s10, %s3468_s10 }
  0x3a   : > { %p3471_p2 = pnand %p3469_p0, %p3862_p8  ;;  %p3478_p4 = por %p3477_p9, %p3476_p7 }
  0x3c   : > { %p3472_p5 = pneg %p3471_p2 }
  0x3e   : > { %p3479_p10 = pnand %p3478_p4, %p3472_p5 }
  0x40   : > { %3482 = shalt.err (!%p3479_p10)
}
  0x41   : > { %3160 = dma.hbm_to_vmem [thread:$0]  (!%p3846_p6), %s5080_s3, 1024, %s3850_s14, [#allocation12], %s5088_s9, %s5088_s9, %s5089_s13  }
  0x42   : > { %s3483_s21 = scalar_lea.hbm %s5082_s5, 3072 }
  0x43   : > { %p3484_p11 = scmp.ne.s32.totalorder %s5082_s5, %s3483_s21  ;;  %p3490_p0 = scmp.lt.u32.totalorder %s3483_s21, %s5082_s5 }
  0x45   : > { %p3486_p12 = pnand %p3484_p11, %p3862_p8 }
  0x47   : > { %p3487_p13 = pneg %p3486_p12 }
  0x49   : > { %p3492_p2 = pnand %p3490_p0, %p3487_p13 }
  0x4b   : > { %3495 = shalt.err (!%p3492_p2)
}
  0x4c   : > { %s3496_s14 = scalar_lea.vmem %s3852_s17, 3072  ;;  %p3504_p4 = scmp.lt.s32.totalorder %s3852_s17, %s3852_s17 }
  0x4d   : > { %p3497_p5 = scmp.ne.s32.totalorder %s3852_s17, %s3496_s14  ;;  %p3505_p10 = scmp.lt.s32.totalorder %s3496_s14, %s3496_s14 }
  0x4f   : > { %p3499_p7 = pnand %p3497_p5, %p3862_p8  ;;  %p3506_p11 = por %p3505_p10, %p3504_p4 }
  0x51   : > { %p3500_p9 = pneg %p3499_p7 }
  0x53   : > { %p3507_p12 = pnand %p3506_p11, %p3500_p9 }
  0x55   : > { %3510 = shalt.err (!%p3507_p12)
}
  0x56   : > { %3166 = dma.hbm_to_vmem [thread:$0]  (!%p3846_p6), %s5082_s5, 3072, %s3852_s17, [#allocation15], %s5088_s9, %s5088_s9, %s5089_s13  }
  0x57   : > { %s3750_s18 = smov [#allocation10]   ;;  %s3751_s20 = smov [#allocation13]  }
  0x58   : > { %s257_s19 = sshll.u32 %s3750_s18, 4  ;;  %s283_s21 = sshll.u32 %s3751_s20, 4  ;;  %s258_s19 = int_to_ptr.vmem [resolvable:$true] %s257_s19  ;;  %s284_s21 = int_to_ptr.vmem [resolvable:$true] %s283_s21 }
  0x59   : > { %s5147_s2 = sld [smem:[#allocation55_spill]] }
  0x5f   : > { %s3511_s25 = scalar_lea.hbm %s5147_s2, 1024 }
  0x60   : > { %p3512_p13 = scmp.ne.s32.totalorder %s5147_s2, %s3511_s25  ;;  %p3518_p5 = scmp.lt.u32.totalorder %s3511_s25, %s5147_s2 }
  0x62   : > { %p3514_p0 = pnand %p3512_p13, %p3862_p8 }
  0x64   : > { %p3515_p2 = pneg %p3514_p0 }
  0x66   : > { %p3520_p7 = pnand %p3518_p5, %p3515_p2 }
  0x68   : > { %3523 = shalt.err (!%p3520_p7)
}
  0x69   : > { %s3524_s17 = scalar_lea.vmem %s258_s19, 1024  ;;  %p3532_p11 = scmp.lt.s32.totalorder %s258_s19, %s258_s19 }
  0x6a   : > { %p3525_p9 = scmp.ne.s32.totalorder %s258_s19, %s3524_s17  ;;  %p3533_p12 = scmp.lt.s32.totalorder %s3524_s17, %s3524_s17 }
  0x6c   : > { %p3527_p4 = pnand %p3525_p9, %p3862_p8  ;;  %p3534_p1 = por %p3533_p12, %p3532_p11 }
  0x6e   : > { %p3528_p10 = pneg %p3527_p4 }
  0x70   : > { %p3535_p3 = pnand %p3534_p1, %p3528_p10 }
  0x72   : > { %3538 = shalt.err (!%p3535_p3)
}
  0x73   : > { %3157 = dma.hbm_to_vmem [thread:$0]  (!%p3846_p6), %s5147_s2, 1024, %s258_s19, [#allocation9], %s5088_s9, %s5088_s9, %s5089_s13  }
  0x74   : > { %s3539_s22 = scalar_lea.hbm %s5081_s4, 1536 }
  0x75   : > { %p3540_p1 = scmp.ne.s32.totalorder %s5081_s4, %s3539_s22  ;;  %p3546_p0 = scmp.lt.u32.totalorder %s3539_s22, %s5081_s4 }
  0x77   : > { %p3542_p3 = pnand %p3540_p1, %p3862_p8 }
  0x79   : > { %p3543_p13 = pneg %p3542_p3 }
  0x7b   : > { %p3548_p2 = pnand %p3546_p0, %p3543_p13 }
  0x7d   : > { %3551 = shalt.err (!%p3548_p2)
}
  0x7e   : > { %s3552_s10 = scalar_lea.vmem %s284_s21, 1536  ;;  %p3560_p4 = scmp.lt.s32.totalorder %s284_s21, %s284_s21 }
  0x7f   : > { %p3553_p5 = scmp.ne.s32.totalorder %s284_s21, %s3552_s10  ;;  %p3561_p10 = scmp.lt.s32.totalorder %s3552_s10, %s3552_s10 }
  0x81   : > { %p3555_p7 = pnand %p3553_p5, %p3862_p8  ;;  %p3562_p11 = por %p3561_p10, %p3560_p4 }
  0x83   : > { %p3556_p9 = pneg %p3555_p7 }
  0x85   : > { %p3563_p12 = pnand %p3562_p11, %p3556_p9 }
  0x87   : > { %3566 = shalt.err (!%p3563_p12)
}
  0x88   : > { %s3752_s19 = smov 64   ;;  %s3753_s17 = smov 4  }
  0x89   : > { %3163 = dma.hbm_to_vmem [thread:$0]  (!%p3846_p6), %s5081_s4, 1536, %s284_s21, [#allocation12], %s3752_s19, %s3752_s19, %s3753_s17  }
  0x8a   : > { %s3754_s18 = smov [#allocation16]   ;;  %s3755_s22 = smov [#allocation17]  }
  0x8b   : > { %s309_s20 = sshll.u32 %s3754_s18, 4  ;;  %s322_s24 = sshll.u32 %s3755_s22, 4  ;;  %s310_s20 = int_to_ptr.vmem [resolvable:$true] %s309_s20  ;;  %s323_s24 = int_to_ptr.vmem [resolvable:$true] %s322_s24 }
  0x8c   : > { %s3567_s14 = scalar_lea.hbm %s5083_s6, 512 }
  0x8d   : > { %p3568_p1 = scmp.ne.s32.totalorder %s5083_s6, %s3567_s14  ;;  %p3574_p0 = scmp.lt.u32.totalorder %s3567_s14, %s5083_s6 }
  0x8f   : > { %p3570_p3 = pnand %p3568_p1, %p3862_p8 }
  0x91   : > { %p3571_p13 = pneg %p3570_p3 }
  0x93   : > { %p3576_p2 = pnand %p3574_p0, %p3571_p13 }
  0x95   : > { %3579 = shalt.err (!%p3576_p2)
}
  0x96   : > { %s3580_s21 = scalar_lea.vmem %s310_s20, 512  ;;  %p3588_p4 = scmp.lt.s32.totalorder %s310_s20, %s310_s20 }
  0x97   : > { %p3581_p5 = scmp.ne.s32.totalorder %s310_s20, %s3580_s21  ;;  %p3589_p10 = scmp.lt.s32.totalorder %s3580_s21, %s3580_s21 }
  0x99   : > { %p3583_p7 = pnand %p3581_p5, %p3862_p8  ;;  %p3590_p11 = por %p3589_p10, %p3588_p4 }
  0x9b   : > { %p3584_p9 = pneg %p3583_p7 }
  0x9d   : > { %p3591_p12 = pnand %p3590_p11, %p3584_p9 }
  0x9f   : > { %3594 = shalt.err (!%p3591_p12)
}
  0xa0   : > { %3169 = dma.hbm_to_vmem [thread:$0]  (!%p3846_p6), %s5083_s6, 512, %s310_s20, [#allocation15], %s3752_s19, %s3752_s19, %s3753_s17  }
  0xa1   : > { %s3595_s16 = scalar_lea.hbm %s5084_s7, 1024 }
  0xa2   : > { %p3596_p1 = scmp.ne.s32.totalorder %s5084_s7, %s3595_s16  ;;  %p3602_p0 = scmp.lt.u32.totalorder %s3595_s16, %s5084_s7 }
  0xa4   : > { %p3598_p3 = pnand %p3596_p1, %p3862_p8 }
  0xa6   : > { %p3599_p13 = pneg %p3598_p3 }
  0xa8   : > { %p3604_p2 = pnand %p3602_p0, %p3599_p13 }
  0xaa   : > { %3607 = shalt.err (!%p3604_p2)
}
  0xab   : > { %s3608_s14 = scalar_lea.vmem %s323_s24, 1024  ;;  %p3616_p4 = scmp.lt.s32.totalorder %s323_s24, %s323_s24 }
  0xac   : > { %p3609_p5 = scmp.ne.s32.totalorder %s323_s24, %s3608_s14  ;;  %p3617_p10 = scmp.lt.s32.totalorder %s3608_s14, %s3608_s14 }
  0xae   : > { %p3611_p7 = pnand %p3609_p5, %p3862_p8  ;;  %p3618_p11 = por %p3617_p10, %p3616_p4 }
  0xb0   : > { %p3612_p9 = pneg %p3611_p7 }
  0xb2   : > { %p3619_p12 = pnand %p3618_p11, %p3612_p9 }
  0xb4   : > { %3622 = shalt.err (!%p3619_p12)
}
  0xb5   : > { %s5148_s19 = smov 8   ;;  %s5149_s17 = smov 128  }
  0xb6   : > { %3172 = dma.hbm_to_vmem [thread:$0]  (!%p3846_p6), %s5084_s7, 1024, %s323_s24, [#allocation18], %s5149_s17, %s5149_s17, %s5148_s19  }
  0xb7   : > { %s2798_s15 = sadd.s32 4294967294, %s3739_s30   ;;  %s4018_s23 = sadd.s32 1, %s3739_s30  }
  0xb8   : > { %s35_s21 = sadd.s32 1, %s3735_s29  ;;  %s32_s9 = ssub.s32 %s3739_s30, %s4018_s23 }
  0xb9   : > { %p42_p8 = scmp.ne.s32.totalorder %s3735_s29, %s3731_s28  ;;  %p33_p1 = scmp.eq.s32.totalorder %s32_s9, 0 }
  0xba   : > { %p43_p3 = scmp.eq.s32.totalorder %s3739_s30, 0  ;;  %p48_p13 = scmp.ne.s32.totalorder %s3731_s28, %s3727_s27 }
  0xbb   : > { %p219_p0 = scmp.eq.s32.totalorder %s3830_s11, 1  ;;  %p5150_p5 = scmp.eq.s32.totalorder %s3830_s11, 0 }
  0xbc   : > { %s4030_s1 = scalar_select %p33_p1, %s3735_s29, %s35_s21  }
  0xbd   : > { %p44_p2 = por %p43_p3, %p42_p8  ;;  %p4034_p7 = por %p5150_p5, %p48_p13 }
  0xbe   : > { %p4038_p6 = por %p219_p0, %p42_p8  ;;  %p225_p9 = scmp.eq.s32.totalorder %s2798_s15, 1 }
  0xbf   : > { %p3188_p4 = scmp.lt.s32.totalorder %s3739_s30, 2  ;;  %s336_s13 = sand.u32 1, %s3735_s29  }
  0xc0   : > { %s5152_s24 = scalar_select %p4038_p6, 1, 0 }
  0xc1   : > { %p4044_p10 = por %p225_p9, %p48_p13  ;;  %s2808_s18 = sshll.u32 %s336_s13, 7 }
  0xc2   : > { %s2917_s22 = sshll.u32 %s3739_s30, 11  ;;  %s340_s19 = scalar_lea.vmem [#allocation5], %s2808_s18 }
  0xc3   : > { %s5153_s16 = scalar_select %p4044_p10, 1, 0 }
  0xc4   : > { %s4052_s14 = scalar_lea.hbm %s5077_s0, %s2917_s22  ;;  %s347_s17 = sshll.u32 %s340_s19, 4  ;;  %s4058_s17 = int_to_ptr.vmem [resolvable:$true] %s347_s17 }
  0xc5   : > { %p4054_p11 = pnand %p3188_p4, %p44_p2  ;;  %s4060_s10 = scalar_lea.sflag [#allocation6], %s336_s13 }
  0xc6   : > { %s3623_s15 = scalar_lea.hbm %s4052_s14, 2048  ;;  %s3628_s18 = scalar_lea.hbm %s5077_s0, 4096 }
  0xc7   : > { %p3624_p12 = scmp.ne.s32.totalorder %s4052_s14, %s3623_s15  ;;  %p3625_p8 = pneg %p4054_p11 }
  0xc8   : > { %p3629_p13 = scmp.lt.u32.totalorder %s4052_s14, %s5077_s0  ;;  %p3630_p0 = scmp.lt.u32.totalorder %s3628_s18, %s3623_s15 }
  0xc9   : > { %p3626_p1 = pnand %p3625_p8, %p3624_p12  ;;  %p3632_p5 = scmp.lt.u32.totalorder %s3623_s15, %s4052_s14 }
  0xca   : > { %p3631_p2 = por %p3630_p0, %p3629_p13 }
  0xcb   : > { %p3627_p3 = pneg %p3626_p1 }
  0xcc   : > { %p3633_p9 = por %p3632_p5, %p3631_p2 }
  0xce   : > { %p3634_p4 = pnand %p3633_p9, %p3627_p3 }
  0xd0   : > { %3637 = shalt.err (!%p3634_p4)
}
  0xd1   : > { %s3638_s13 = scalar_lea.vmem %s4058_s17, 2048  ;;  %s3756_s26 = smov [#allocation5]  }
  0xd2   : > { %p3639_p12 = scmp.ne.s32.totalorder %s4058_s17, %s3638_s13  ;;  %s3643_s19 = sshll.u32 %s3756_s26, 4  ;;  %s3644_s19 = int_to_ptr.vmem [resolvable:$false] %s3643_s19 }
  0xd3   : > { %s3645_s21 = scalar_lea.vmem %s3644_s19, 4096  ;;  %p3646_p6 = scmp.lt.s32.totalorder %s4058_s17, %s3644_s19 }
  0xd4   : > { %p3641_p1 = pnand %p3639_p12, %p3625_p8  ;;  %p3647_p13 = scmp.lt.s32.totalorder %s3645_s21, %s3638_s13 }
  0xd6   : > { %p3642_p10 = pneg %p3641_p1  ;;  %p3648_p0 = por %p3647_p13, %p3646_p6 }
  0xd8   : > { %p3649_p2 = pnand %p3648_p0, %p3642_p10 }
  0xda   : > { %3652 = shalt.err (!%p3649_p2)
}
  0xdb   : > { %s3757_s15 = smov 256   ;;  %s3758_s9 = smov 16  }
  0xdc   : > { %3176 = dma.hbm_to_vmem [thread:$0]  (!%p4054_p11), %s4052_s14, 2048, %s4058_s17, %s4060_s10, %s3757_s15, %s3757_s15, %s3758_s9  }
  0xdd   : > { %p5155_p8 = scmp.ne.s32.totalorder %s5143_s12, 0 }
  0xde   : > { %s4091_s18 = sand.u32 (!%p5155_p8), 1, %s3731_s28  }
  0xdf   : > { %359 = sbr.rel (%p5155_p8) target bundleno = 3101 (0xc1d), region = 52  ;;  %s2812_s22 = sshll.u32 (!%p5155_p8), %s4091_s18, 7 }
  0xe0   : > { %s362_s25 = scalar_lea.sflag (!%p5155_p8), [#allocation6], %s4091_s18  ;;  %s4097_s13 = scalar_lea.vmem (!%p5155_p8), [#allocation5], %s2812_s22 }
  0xe6   : > { %3702 = dma.done.wait (%p4034_p7), %s362_s25, 2048  }
  0xe7   : > { %3704 = vsyncadd (%p4034_p7), %s362_s25, 4294965248  ;;  %p5156_p6 = scmp.eq.s32.totalorder %s3830_s11, 0 }
  0xe9   : > { %3706 = dma.done.wait (%p5156_p6), [#allocation9], 1536   ;;  %p5157_p10 = pmov %p5156_p6 }
  0xea   : > { %p5158_p11 = pmov %p5156_p6 }
  0xeb   : > { %3708 = vsyncadd (%p5157_p10), [#allocation9], 4294965760 }
  0xec   : > { %3710 = dma.done.wait (%p5158_p11), [#allocation12], 2560   ;;  %p5159_p3 = pmov %p5156_p6 }
  0xee   : > { %3712 = vsyncadd (%p5159_p3), [#allocation12], 4294964736  ;;  %p5160_p5 = pmov %p5159_p3 }
  0xef   : > { %p5161_p9 = pmov %p5159_p3 }
  0xf0   : > { %3714 = dma.done.wait (%p5160_p5), [#allocation15], 3584  }
  0xf1   : > { %3716 = vsyncadd (%p5161_p9), [#allocation15], 4294963712  ;;  %p5162_p7 = pmov %p5159_p3 }
  0xf2   : > { %p5163_p4 = pmov %p5159_p3 }
  0xf3   : > { %3718 = dma.done.wait (%p5162_p7), [#allocation18], 1024  }
  0xf4   : > { %3720 = vsyncadd (%p5163_p4), [#allocation18], 4294966272  ;;  %vm1644_vm0 = vcmask 1040384   ;;  %vm1645_vm1 = vsmask.f32 256  ;;  %vm1647_vm2 = vcmask 1044484  }
  0xf5   : > { %vm1646_vm3 = vmand %vm1644_vm0, %vm1645_vm1  ;;  %vm1648_vm4 = vsmask.f32 4352  ;;  %v1651_v0 = vld [vmem:[#allocation4 + $0x20] sm:$0x11]  ;;  %v4120_v1 = vld [vmem:[%s4097_s13 + $0x20] sm:$0xff]  ;;  %vm472_vm7 = vcmask 523264  }
  0xf6   : > { %vm1649_vm5 = vmand %vm1647_vm2, %vm1648_vm4  ;;  %v4123_v2 = vld [vmem:[%s4097_s13 + $0x28] sm:$0xff]  ;;  %v4128_v5 = vld [vmem:[%s4097_s13] sm:$0xff]  ;;  %vm607_vm8 = vcmask 261120   ;;  %v5091_v43 = vmov 0   ;;  %s4411_s12 = scalar_lea.vmem [#allocation19], %s2812_s22  ;;  %s4413_s2 = smov 0  }
  0xf7   : > { %vm1650_vm6 = vmor %vm1649_vm5, %vm1646_vm3  ;;  %v454_v4 = vadd.f32 %v4123_v2, %v4120_v1  ;;  %v4131_v6 = vld [vmem:[%s4097_s13 + $0x8] sm:$0xff]  ;;  %v4134_v7 = vld [vmem:[%s4097_s13 + $0x30] sm:$0xff]  ;;  %3255 = vset.pattern.permute.xlu1 %v5091_v43 }
  0xf8   : > { %v1652_v3 = vsel %vm1650_vm6, 1065369472, %v1651_v0  ;;  %v448_v8 = vadd.f32 %v4131_v6, %v4128_v5  ;;  %v4139_v9 = vld [vmem:[%s4097_s13 + $0x38] sm:$0xff]  ;;  %v4142_v10 = vld [vmem:[%s4097_s13 + $0x10] sm:$0xff]  ;;  %v4158_v16 = vld [vmem:[%s4097_s13 + $0x40] sm:$0xff] }
  0xf9   : > { %1653 = vst [vmem:[#allocation4 + $0x20] sm:$0x11] %v1652_v3  ;;  %v4145_v11 = vld [vmem:[%s4097_s13 + $0x18] sm:$0xff]  ;;  %455 = vadd.xlane.f32.xlu1 %v454_v4  ;;  %v457_v12 = vadd.f32 %v4139_v9, %v4134_v7  ;;  %v4152_v14 = vld [vmem:[%s4097_s13 + $0x50] sm:$0xff]  ;;  %v4161_v17 = vld [vmem:[%s4097_s13 + $0x48] sm:$0xff] }
  0xfa   : > { %449 = vadd.xlane.f32.xlu0 %v448_v8  ;;  %v451_v13 = vadd.f32 %v4145_v11, %v4142_v10  ;;  %v4155_v15 = vld [vmem:[%s4097_s13 + $0x58] sm:$0xff]  ;;  %v4164_v18 = vld [vmem:[%s4097_s13 + $0x70] sm:$0xff]  ;;  %v4172_v21 = vld [vmem:[%s4097_s13 + $0x60] sm:$0xff]  ;;  %v460_v23 = vadd.f32 %v4161_v17, %v4158_v16 }
  0xfb   : > { %v4167_v19 = vld [vmem:[%s4097_s13 + $0x78] sm:$0xff]  ;;  %v463_v20 = vadd.f32 %v4155_v15, %v4152_v14  ;;  %v4175_v22 = vld [vmem:[%s4097_s13 + $0x68] sm:$0xff]  ;;  %v4183_v26 = vld [vmem:[#allocation8] sm:$0xff] }
  0xfc   : > { %v469_v24 = vadd.f32 %v4167_v19, %v4164_v18  ;;  %v466_v25 = vadd.f32 %v4175_v22, %v4172_v21  ;;  %2987 = vmatprep.mubr.msk.f32.mxu0 %vm472_vm7, %v4183_v26  ;;  %v4188_v27 = vld [vmem:[#allocation8 + $0x8] sm:$0xff]  ;;  %v4191_v28 = vld [vmem:[#allocation8 + $0x10] sm:$0xff]  ;;  %v4194_v29 = vld [vmem:[#allocation8 + $0x18] sm:$0xff] }
  0xfd   : > { %458 = vadd.xlane.f32.xlu1 %v457_v12 }
  0xfe   : > { %452 = vadd.xlane.f32.xlu0 %v451_v13 }
 0x101   : > { %464 = vadd.xlane.f32.xlu1 %v463_v20 }
 0x102   : > { %461 = vadd.xlane.f32.xlu0 %v460_v23 }
 0x105   : > { %470 = vadd.xlane.f32.xlu1 %v469_v24 }
 0x106   : > { %467 = vadd.xlane.f32.xlu0 %v466_v25 }
 0x133   : > { %575 = vxpose.xlu0.b32.start [1/4] (short) (narrow) %v4183_v26, 64 }
 0x137   : > { %576 = vxpose.xlu0.b32.cont [2/4] (short) (narrow) %v4188_v27, 64 }
 0x13b   : > { %577 = vxpose.xlu0.b32.cont [3/4] (short) (narrow) %v4191_v28, 64 }
 0x13f   : > { %578 = vxpose.xlu0.b32.end [4/4] (short) (narrow) %v4194_v29, 64 }
 0x168   : > { %3256 = vset.pattern.permute.xlu0 %v5091_v43 }
 0x186   : > { %v456_v30 = vpop.xlane.xlu1 %455 }
 0x187   : > { %v450_v31 = vpop.xlane.xlu0 %449 }
 0x18a   : > { %v459_v32 = vpop.xlane.xlu1 %458 }
 0x18b   : > { %v453_v33 = vpop.xlane.xlu0 %452  ;;  %v3059_v35 = vpack.c.bf16 %v459_v32, %v456_v30 }
 0x18c   : > { %v3055_v34 = vpack.c.bf16 %v453_v33, %v450_v31 }
 0x18e   : > { %3056 = vmatprep.subr.bf16.mxu0 %v3055_v34  ;;  %v465_v36 = vpop.xlane.xlu1 %464 }
 0x18f   : > { %3058 = vmatpush3.bf16.msra.mxu0 %v3055_v34  ;;  %v462_v37 = vpop.xlane.xlu0 %461 }
 0x190   : > { %3060 = vmatprep.subr.bf16.mxu0 %v3059_v35  ;;  %v3063_v38 = vpack.c.bf16 %v465_v36, %v462_v37 }
 0x192   : > { %v471_v39 = vpop.xlane.xlu1 %470 }
 0x193   : > { %3062 = vmatpush3.bf16.msra.mxu0 %v3059_v35  ;;  %v468_v40 = vpop.xlane.xlu0 %467 }
 0x194   : > { %3064 = vmatprep.subr.bf16.mxu0 %v3063_v38  ;;  %v3067_v41 = vpack.c.bf16 %v471_v39, %v468_v40 }
 0x197   : > { %3066 = vmatpush3.bf16.msra.mxu0 %v3063_v38 }
 0x198   : > { %3068 = vmatprep.subr.bf16.mxu0 %v3067_v41 }
 0x19b   : > { %3070 = vmatpush3.bf16.msra.mxu0 %v3067_v41 }
 0x19e   : > { %2988 = vmatmul.mubr.msk.f32.vlgmr.msra.gmra.mrb[0].mxu0 %vm472_vm7, %v4188_v27 }
 0x19f   : > { %2990 = vmatprep.mubr.msk.f32.mxu0 %vm472_vm7, %v4191_v28 }
 0x1a2   : > { %2991 = vmatmul.mubr.msk.f32.gmra.mrb[2].mxu0 %vm472_vm7, %v4194_v29 }
 0x1b3   : > { %v591_v42 = vpop.trf.xlu0 }
 0x1b4   : > { %3001 = vmatprep.mubr.msk.f32.mxu1 %vm607_vm8, %v591_v42  ;;  %3043 = vmatprep.mubr.msk.f32.mxu0 %vm607_vm8, %v591_v42 }
 0x1b7   : > { %v4207_v44 = vpop.trf.xlu0 }
 0x1bb   : > { %v4209_v45 = vpop.trf.xlu0 }
 0x1bf   : > { %v4211_v46 = vpop.trf.xlu0 }
 0x1c3   : > { %v4213_v55 = vpop.trf.xlu0 }
 0x1c7   : > { %v4215_v58 = vpop.trf.xlu0 }
 0x1cb   : > { %v4221_v59 = vpop.trf.xlu0 }
 0x1cf   : > { %v4231_v60 = vpop.trf.xlu0 }
 0x271   : > { %v2989_v47 = vpop.f32.mrb[0].mxu0 }
 0x272   : > { %v572_v48 = vmul.f32 0.001953125, %v2989_v47  ;;  %v551_v49 = vpop.f32.mrb[1].mxu0 }
 0x273   : > { %v571_v50 = vmul.f32 0.001953125, %v551_v49 }
 0x275   : > { %v2992_v51 = vpop.f32.mrb[2].mxu0  ;;  %v3071_v52 = vpack.c.bf16 %v572_v48, %v571_v50 }
 0x276   : > { %v574_v53 = vmul.f32 0.001953125, %v2992_v51  ;;  %v561_v54 = vpop.f32.mrb[3].mxu0 }
 0x277   : > { %v573_v56 = vmul.f32 0.001953125, %v561_v54  ;;  %3072 = vmatprep.subr.bf16.mxu1 %v3071_v52 }
 0x278   : > { %3074 = vmatpush3.bf16.msra.mxu1 %v3071_v52 }
 0x279   : > { %v3075_v57 = vpack.c.bf16 %v574_v53, %v573_v56 }
 0x27b   : > { %3076 = vmatprep.subr.bf16.mxu1 %v3075_v57 }
 0x27c   : > { %3078 = vmatpush3.bf16.msra.mxu1 %v3075_v57 }
 0x27f   : > { %3002 = vmatmul.mubr.msk.f32.vlgmr.msra.gmra.mrb[0].mxu1 %vm607_vm8, %v4207_v44 }
 0x280   : > { %3004 = vmatprep.mubr.msk.f32.mxu1 %vm607_vm8, %v4209_v45 }
 0x283   : > { %3005 = vmatmul.mubr.msk.f32.gmra.mrb[2].mxu1 %vm607_vm8, %v4211_v46 }
 0x284   : > { %3007 = vmatprep.mubr.msk.f32.mxu1 %vm607_vm8, %v4213_v55 }
 0x287   : > { %3008 = vmatmul.mubr.msk.f32.gmra.mrb[4].mxu1 %vm607_vm8, %v4215_v58 }
 0x288   : > { %3010 = vmatprep.mubr.msk.f32.mxu1 %vm607_vm8, %v4221_v59 }
 0x28b   : > { %3011 = vmatmul.mubr.msk.f32.gmra.mrb[6].mxu1 %vm607_vm8, %v4231_v60 }
 0x28c   : > { %3029 = vmatprep.mubr.msk.f32.mxu1 %vm472_vm7, %v4183_v26 }
 0x352   : > { %v3003_v61 = vpop.f32.mrb[0].mxu1 }
 0x353   : > { %744 = vperm.xlu1 %3255, %v3003_v61   ;;  %v698_v62 = vpop.f32.mrb[1].mxu1 }
 0x356   : > { %v3006_v63 = vpop.f32.mrb[2].mxu1 }
 0x357   : > { %739 = vperm.xlu1 %3255, %v698_v62   ;;  %v708_v0 = vpop.f32.mrb[3].mxu1 }
 0x35a   : > { %v3009_v3 = vpop.f32.mrb[4].mxu1 }
 0x35b   : > { %754 = vperm.xlu1 %3255, %v3006_v63   ;;  %v718_v4 = vpop.f32.mrb[5].mxu1 }
 0x35e   : > { %v3012_v8 = vpop.f32.mrb[6].mxu1 }
 0x35f   : > { %749 = vperm.xlu1 %3255, %v708_v0   ;;  %v728_v12 = vpop.f32.mrb[7].mxu1 }
 0x363   : > { %764 = vperm.xlu1 %3255, %v3009_v3  }
 0x367   : > { %759 = vperm.xlu1 %3255, %v718_v4   ;;  %v1107_v4 = vld [vmem:[#allocation11] sm:$0xff] }
 0x36b   : > { %769 = vperm.xlu1 %3255, %v728_v12   ;;  %v1109_v12 = vld [vmem:[#allocation11 + $0x10] sm:$0xff] }
 0x36f   : > { %774 = vperm.xlu1 %3255, %v3012_v8   ;;  %v1108_v8 = vld [vmem:[#allocation11 + $0x8] sm:$0xff] }
 0x3d2   : > { %v745_v13 = vpop.permute.xlu1 %744 }
 0x3d3   : > { %v4238_v20 = vsub.f32 %v4142_v10, %v745_v13  ;;  %v4241_v23 = vsub.f32 %v4145_v11, %v745_v13  ;;  %v1112_v13 = vld [vmem:[#allocation11 + $0x28] sm:$0xff] }
 0x3d5   : > { %v795_v24 = vmul.f32 %v4238_v20, %v4238_v20  ;;  %v796_v25 = vmul.f32 %v4241_v23, %v4241_v23 }
 0x3d6   : > { %v740_v26 = vpop.permute.xlu1 %739 }
 0x3d7   : > { %v4248_v30 = vsub.f32 %v4128_v5, %v740_v26  ;;  %v4251_v31 = vsub.f32 %v4131_v6, %v740_v26  ;;  %v812_v32 = vadd.f32 %v796_v25, %v795_v24 }
 0x3d9   : > { %813 = vadd.xlane.f32.xlu0 %v812_v32  ;;  %v793_v10 = vmul.f32 %v4248_v30, %v4248_v30  ;;  %v794_v11 = vmul.f32 %v4251_v31, %v4251_v31 }
 0x3da   : > { %v755_v33 = vpop.permute.xlu1 %754 }
 0x3db   : > { %v4258_v34 = vsub.f32 %v4134_v7, %v755_v33  ;;  %v4261_v35 = vsub.f32 %v4139_v9, %v755_v33  ;;  %v809_v5 = vadd.f32 %v794_v11, %v793_v10 }
 0x3dd   : > { %810 = vadd.xlane.f32.xlu1 %v809_v5  ;;  %v799_v6 = vmul.f32 %v4258_v34, %v4258_v34  ;;  %v800_v36 = vmul.f32 %v4261_v35, %v4261_v35 }
 0x3de   : > { %v750_v37 = vpop.permute.xlu1 %749 }
 0x3df   : > { %v4268_v38 = vsub.f32 %v4120_v1, %v750_v37  ;;  %v4271_v39 = vsub.f32 %v4123_v2, %v750_v37  ;;  %v818_v7 = vadd.f32 %v800_v36, %v799_v6 }
 0x3e1   : > { %819 = vadd.xlane.f32.xlu1 %v818_v7  ;;  %v797_v9 = vmul.f32 %v4268_v38, %v4268_v38  ;;  %v798_v40 = vmul.f32 %v4271_v39, %v4271_v39 }
 0x3e2   : > { %v765_v41 = vpop.permute.xlu1 %764 }
 0x3e3   : > { %v4278_v42 = vsub.f32 %v4152_v14, %v765_v41  ;;  %v4281_v47 = vsub.f32 %v4155_v15, %v765_v41  ;;  %v815_v1 = vadd.f32 %v798_v40, %v797_v9 }
 0x3e5   : > { %816 = vadd.xlane.f32.xlu1 %v815_v1  ;;  %v803_v2 = vmul.f32 %v4278_v42, %v4278_v42  ;;  %v804_v48 = vmul.f32 %v4281_v47, %v4281_v47 }
 0x3e6   : > { %v760_v49 = vpop.permute.xlu1 %759 }
 0x3e7   : > { %v4288_v50 = vsub.f32 %v4158_v16, %v760_v49  ;;  %v4291_v51 = vsub.f32 %v4161_v17, %v760_v49  ;;  %v824_v14 = vadd.f32 %v804_v48, %v803_v2 }
 0x3e9   : > { %825 = vadd.xlane.f32.xlu1 %v824_v14  ;;  %v801_v15 = vmul.f32 %v4288_v50, %v4288_v50  ;;  %v802_v52 = vmul.f32 %v4291_v51, %v4291_v51 }
 0x3ea   : > { %v770_v53 = vpop.permute.xlu1 %769 }
 0x3eb   : > { %v4298_v54 = vsub.f32 %v4172_v21, %v770_v53  ;;  %v4301_v56 = vsub.f32 %v4175_v22, %v770_v53  ;;  %v821_v16 = vadd.f32 %v802_v52, %v801_v15 }
 0x3ed   : > { %822 = vadd.xlane.f32.xlu1 %v821_v16  ;;  %v805_v17 = vmul.f32 %v4298_v54, %v4298_v54  ;;  %v806_v57 = vmul.f32 %v4301_v56, %v4301_v56 }
 0x3ee   : > { %v775_v61 = vpop.permute.xlu1 %774 }
 0x3ef   : > { %v4308_v62 = vsub.f32 %v4164_v18, %v775_v61  ;;  %v4311_v63 = vsub.f32 %v4167_v19, %v775_v61  ;;  %v827_v21 = vadd.f32 %v806_v57, %v805_v17  ;;  %v1110_v18 = vld [vmem:[#allocation11 + $0x18] sm:$0xff]  ;;  %v1111_v19 = vld [vmem:[#allocation11 + $0x20] sm:$0xff] }
 0x3f1   : > { %828 = vadd.xlane.f32.xlu1 %v827_v21  ;;  %v807_v22 = vmul.f32 %v4308_v62, %v4308_v62  ;;  %v808_v0 = vmul.f32 %v4311_v63, %v4311_v63  ;;  %v1035_v21 = vld [vmem:[#allocation10] sm:$0xff] }
 0x3f3   : > { %v830_v3 = vadd.f32 %v808_v0, %v807_v22 }
 0x3f5   : > { %831 = vadd.xlane.f32.xlu1 %v830_v3  ;;  %v1038_v3 = vld [vmem:[#allocation10 + $0x18] sm:$0xff] }
 0x406   : > { %1117 = vperm.xlu1 %3255, %v1107_v4  }
 0x40a   : > { %1122 = vperm.xlu1 %3255, %v1108_v8   ;;  %v1037_v8 = vld [vmem:[#allocation10 + $0x10] sm:$0xff] }
 0x40e   : > { %1127 = vperm.xlu1 %3255, %v1109_v12  }
 0x412   : > { %1132 = vperm.xlu1 %3255, %v1110_v18  }
 0x416   : > { %1137 = vperm.xlu1 %3255, %v1111_v19   ;;  %v1041_v19 = vld [vmem:[#allocation10 + $0x30] sm:$0xff] }
 0x41a   : > { %1142 = vperm.xlu1 %3255, %v1112_v13  }
 0x466   : > { %v814_v24 = vpop.xlane.xlu0 %813 }
 0x46a   : > { %v811_v25 = vpop.xlane.xlu1 %810 }
 0x46b   : > { %v3079_v26 = vpack.c.bf16 %v814_v24, %v811_v25 }
 0x46d   : > { %3080 = vmatprep.subr.bf16.mxu1 %v3079_v26 }
 0x46e   : > { %v820_v32 = vpop.xlane.xlu1 %819  ;;  %3082 = vmatpush3.bf16.msra.mxu1 %v3079_v26 }
 0x472   : > { %v817_v10 = vpop.xlane.xlu1 %816 }
 0x473   : > { %v3083_v11 = vpack.c.bf16 %v820_v32, %v817_v10  ;;  %v1039_v32 = vld [vmem:[#allocation10 + $0x20] sm:$0xff]  ;;  %v1113_v10 = vld [vmem:[#allocation11 + $0x30] sm:$0xff] }
 0x475   : > { %3084 = vmatprep.subr.bf16.mxu1 %v3083_v11 }
 0x476   : > { %v826_v33 = vpop.xlane.xlu1 %825  ;;  %3086 = vmatpush3.bf16.msra.mxu1 %v3083_v11 }
 0x47a   : > { %v823_v5 = vpop.xlane.xlu1 %822 }
 0x47b   : > { %v3087_v6 = vpack.c.bf16 %v826_v33, %v823_v5  ;;  %v1042_v33 = vld [vmem:[#allocation10 + $0x38] sm:$0xff]  ;;  %v1203_v5 = vld [vmem:[#allocation14] sm:$0xff] }
 0x47d   : > { %3088 = vmatprep.subr.bf16.mxu1 %v3087_v6 }
 0x47e   : > { %v829_v36 = vpop.xlane.xlu1 %828  ;;  %3090 = vmatpush3.bf16.msra.mxu1 %v3087_v6 }
 0x482   : > { %v832_v37 = vpop.xlane.xlu1 %831 }
 0x483   : > { %v3091_v7 = vpack.c.bf16 %v832_v37, %v829_v36  ;;  %v1114_v36 = vld [vmem:[#allocation11 + $0x38] sm:$0xff]  ;;  %v1205_v37 = vld [vmem:[#allocation14 + $0x10] sm:$0xff] }
 0x485   : > { %3092 = vmatprep.subr.bf16.mxu1 %v3091_v7 }
 0x486   : > { %3094 = vmatpush3.bf16.msra.mxu1 %v3091_v7  ;;  %v1204_v7 = vld [vmem:[#allocation14 + $0x8] sm:$0xff] }
 0x489   : > { %3030 = vmatmul.mubr.msk.f32.vlgmr.msra.gmra.mrb[8].mxu1 %vm472_vm7, %v4188_v27 }
 0x48a   : > { %3032 = vmatprep.mubr.msk.f32.mxu1 %vm472_vm7, %v4191_v28 }
 0x48d   : > { %3033 = vmatmul.mubr.msk.f32.gmra.mrb[10].mxu1 %vm472_vm7, %v4194_v29 }
 0x48e   : > { %1535 = vmatprep.mubr.bf16.mxu1 %v5091_v43 }
 0x55c   : > { %v3031_v9 = vpop.f32.mrb[8].mxu1 }
 0x55d   : > { %v919_v40 = vmul.f32 0.001953125, %v3031_v9  ;;  %v899_v41 = vpop.f32.mrb[9].mxu1  ;;  %v1207_v9 = vld [vmem:[#allocation14 + $0x20] sm:$0xff] }
 0x55e   : > { %v918_v1 = vmul.f32 0.001953125, %v899_v41  ;;  %v1209_v41 = vld [vmem:[#allocation14 + $0x30] sm:$0xff] }
 0x55f   : > { %v923_v2 = vadd.f32 1e-05, %v919_v40  ;;  %v1206_v40 = vld [vmem:[#allocation14 + $0x18] sm:$0xff] }
 0x560   : > { %v922_v48 = vadd.f32 1e-05, %v918_v1  ;;  %v3034_v49 = vpop.f32.mrb[10].mxu1  ;;  %v1208_v1 = vld [vmem:[#allocation14 + $0x28] sm:$0xff] }
 0x561   : > { %3269 = vrsqrt.f32 %v923_v2  ;;  %v921_v14 = vmul.f32 0.001953125, %v3034_v49  ;;  %v909_v15 = vpop.f32.mrb[11].mxu1  ;;  %v1211_v2 = vld [vmem:[#allocation14 + $0x40] sm:$0xff]  ;;  %v1213_v49 = vld [vmem:[#allocation14 + $0x50] sm:$0xff] }
 0x562   : > { %3271 = vrsqrt.f32 %v922_v48  ;;  %v920_v27 = vmul.f32 0.001953125, %v909_v15  ;;  %v1210_v48 = vld [vmem:[#allocation14 + $0x38] sm:$0xff]  ;;  %v1215_v15 = vld [vmem:[#allocation14 + $0x60] sm:$0xff] }
 0x563   : > { %v925_v52 = vadd.f32 1e-05, %v921_v14  ;;  %v1212_v14 = vld [vmem:[#allocation14 + $0x48] sm:$0xff] }
 0x564   : > { %v924_v53 = vadd.f32 1e-05, %v920_v27  ;;  %v1214_v27 = vld [vmem:[#allocation14 + $0x58] sm:$0xff] }
 0x565   : > { %3273 = vrsqrt.f32 %v925_v52  ;;  %v1217_v52 = vld [vmem:[#allocation14 + $0x70] sm:$0xff] }
 0x566   : > { %3275 = vrsqrt.f32 %v924_v53  ;;  %v1216_v53 = vld [vmem:[#allocation14 + $0x68] sm:$0xff] }
 0x56b   : > { %v3270_v28 = vpop.eup %3269 }
 0x56c   : > { %v3272_v29 = vpop.eup %3271 }
 0x56d   : > { %v3095_v16 = vpack.c.bf16 %v3270_v28, %v3272_v29  ;;  %v1219_v28 = vld [vmem:[#allocation14 + $0x80] sm:$0xff]  ;;  %v1218_v29 = vld [vmem:[#allocation14 + $0x78] sm:$0xff] }
 0x56f   : > { %v3274_v17 = vpop.eup %3273  ;;  %3096 = vmatprep.subr.bf16.mxu0 %v3095_v16 }
 0x570   : > { %v3276_v57 = vpop.eup %3275  ;;  %3098 = vmatpush3.bf16.msra.mxu0 %v3095_v16  ;;  %v1221_v16 = vld [vmem:[#allocation14 + $0x90] sm:$0xff] }
 0x571   : > { %v3099_v61 = vpack.c.bf16 %v3274_v17, %v3276_v57  ;;  %v1220_v17 = vld [vmem:[#allocation14 + $0x88] sm:$0xff]  ;;  %v1223_v57 = vld [vmem:[#allocation14 + $0xa0] sm:$0xff] }
 0x573   : > { %3100 = vmatprep.subr.bf16.mxu0 %v3099_v61 }
 0x574   : > { %3102 = vmatpush3.bf16.msra.mxu0 %v3099_v61  ;;  %v1222_v61 = vld [vmem:[#allocation14 + $0x98] sm:$0xff] }
 0x577   : > { %3044 = vmatmul.mubr.msk.f32.vlgmr.msra.gmra.mrb[4].mxu0 %vm607_vm8, %v4207_v44  ;;  %v1036_v44 = vld [vmem:[#allocation10 + $0x8] sm:$0xff] }
 0x578   : > { %3046 = vmatprep.mubr.msk.f32.mxu0 %vm607_vm8, %v4209_v45 }
 0x57b   : > { %3047 = vmatmul.mubr.msk.f32.gmra.mrb[6].mxu0 %vm607_vm8, %v4211_v46 }
 0x57c   : > { %3049 = vmatprep.mubr.msk.f32.mxu0 %vm607_vm8, %v4213_v55 }
 0x57f   : > { %3050 = vmatmul.mubr.msk.f32.gmra.mrb[8].mxu0 %vm607_vm8, %v4215_v58 }
 0x580   : > { %3052 = vmatprep.mubr.msk.f32.mxu0 %vm607_vm8, %v4221_v59 }
 0x583   : > { %3053 = vmatmul.mubr.msk.f32.gmra.mrb[10].mxu0 %vm607_vm8, %v4231_v60  ;;  %v1040_v60 = vld [vmem:[#allocation10 + $0x28] sm:$0xff] }
 0x584   : > { %1475 = vmatprep.mubr.bf16.mxu0 %v5091_v43 }
 0x64a   : > { %v3045_v45 = vpop.f32.mrb[4].mxu0 }
 0x64b   : > { %v1044_v22 = vmul.f32 %v3045_v45, %v1036_v44  ;;  %v996_v0 = vpop.f32.mrb[5].mxu0  ;;  %v1225_v44 = vld [vmem:[#allocation14 + $0xb0] sm:$0xff]  ;;  %v1226_v45 = vld [vmem:[#allocation14 + $0xb8] sm:$0xff] }
 0x64c   : > { %v1043_v46 = vmul.f32 %v1035_v21, %v996_v0  ;;  %v1224_v21 = vld [vmem:[#allocation14 + $0xa8] sm:$0xff] }
 0x64d   : > { %1058 = vperm.xlu0 %3256, %v1044_v22   ;;  %v1118_v22 = vpop.permute.xlu1 %1117 }
 0x64e   : > { %1053 = vperm.xlu1 %3255, %v1043_v46   ;;  %v3048_v55 = vpop.f32.mrb[6].mxu0 }
 0x64f   : > { %v1046_v4 = vmul.f32 %v3048_v55, %v1038_v3  ;;  %v1006_v58 = vpop.f32.mrb[7].mxu0 }
 0x650   : > { %v1045_v18 = vmul.f32 %v1037_v8, %v1006_v58 }
 0x651   : > { %v1123_v0 = vpop.permute.xlu1 %1122 }
 0x652   : > { %1068 = vperm.xlu1 %3255, %v1046_v4   ;;  %v3051_v59 = vpop.f32.mrb[8].mxu0 }
 0x653   : > { %v1016_v12 = vpop.f32.mrb[9].mxu0  ;;  %v1048_v25 = vmul.f32 %v3051_v59, %v1040_v60 }
 0x654   : > { %v1047_v11 = vmul.f32 %v1039_v32, %v1016_v12 }
 0x655   : > { %v1128_v46 = vpop.permute.xlu1 %1127 }
 0x656   : > { %1063 = vperm.xlu1 %3255, %v1045_v18   ;;  %v3054_v13 = vpop.f32.mrb[10].mxu0 }
 0x657   : > { %v1026_v24 = vpop.f32.mrb[11].mxu0  ;;  %v1050_v6 = vmul.f32 %v3054_v13, %v1042_v33 }
 0x658   : > { %v1049_v26 = vmul.f32 %v1041_v19, %v1026_v24 }
 0x659   : > { %v1133_v3 = vpop.permute.xlu1 %1132 }
 0x65a   : > { %1078 = vperm.xlu1 %3255, %v1048_v25   ;;  %1083 = vperm.xlu0 %3256, %v1049_v26  }
 0x65d   : > { %v1138_v55 = vpop.permute.xlu1 %1137 }
 0x65e   : > { %1073 = vperm.xlu1 %3255, %v1047_v11   ;;  %1147 = vperm.xlu0 %3256, %v1113_v10  }
 0x661   : > { %v1143_v4 = vpop.permute.xlu1 %1142 }
 0x662   : > { %1088 = vperm.xlu1 %3255, %v1050_v6   ;;  %1229 = vperm.xlu0 %3256, %v1203_v5  }
 0x666   : > { %1152 = vperm.xlu1 %3255, %v1114_v36   ;;  %1239 = vperm.xlu0 %3256, %v1205_v37  }
 0x66a   : > { %1234 = vperm.xlu1 %3255, %v1204_v7   ;;  %1249 = vperm.xlu0 %3256, %v1207_v9  }
 0x66e   : > { %1244 = vperm.xlu1 %3255, %v1206_v40   ;;  %1259 = vperm.xlu0 %3256, %v1209_v41  }
 0x672   : > { %1254 = vperm.xlu1 %3255, %v1208_v1   ;;  %1269 = vperm.xlu0 %3256, %v1211_v2  }
 0x676   : > { %1264 = vperm.xlu1 %3255, %v1210_v48   ;;  %1279 = vperm.xlu0 %3256, %v1213_v49  }
 0x67a   : > { %1274 = vperm.xlu1 %3255, %v1212_v14   ;;  %1289 = vperm.xlu0 %3256, %v1215_v15  }
 0x67e   : > { %1284 = vperm.xlu1 %3255, %v1214_v27   ;;  %1299 = vperm.xlu0 %3256, %v1217_v52  }
 0x682   : > { %1294 = vperm.xlu1 %3255, %v1216_v53   ;;  %1309 = vperm.xlu0 %3256, %v1219_v28  }
 0x686   : > { %1304 = vperm.xlu1 %3255, %v1218_v29   ;;  %1319 = vperm.xlu0 %3256, %v1221_v16  }
 0x68a   : > { %1314 = vperm.xlu1 %3255, %v1220_v17   ;;  %1329 = vperm.xlu0 %3256, %v1223_v57  }
 0x68e   : > { %1324 = vperm.xlu1 %3255, %v1222_v61   ;;  %1339 = vperm.xlu0 %3256, %v1225_v44   ;;  %v3258_v44 = vld [vmem:[#allocation13 + $0x30] sm:$0xff]  }
 0x692   : > { %1334 = vperm.xlu1 %3255, %v1224_v21   ;;  %v3262_v21 = vld [vmem:[#allocation13 + $0x40] sm:$0xff]  }
 0x696   : > { %1344 = vperm.xlu1 %3255, %v1226_v45   ;;  %v3263_v45 = vld [vmem:[#allocation13 + $0x18] sm:$0xff]  }
 0x6cc   : > { %v1059_v58 = vpop.permute.xlu0 %1058 }
 0x6cd   : > { %v1093_v8 = vmul.f32 %v1059_v58, %v4238_v20  ;;  %v1094_v59 = vmul.f32 %v1059_v58, %v4241_v23  ;;  %v1054_v12 = vpop.permute.xlu1 %1053 }
 0x6ce   : > { %v1091_v18 = vmul.f32 %v1054_v12, %v4248_v30  ;;  %v1092_v60 = vmul.f32 %v1054_v12, %v4251_v31 }
 0x6cf   : > { %v1157_v19 = vadd.f32 %v1123_v0, %v1093_v8  ;;  %v1158_v13 = vadd.f32 %v1123_v0, %v1094_v59  ;;  %v3265_v0 = vld [vmem:[#allocation13 + $0x20] sm:$0xff]  }
 0x6d0   : > { %v1155_v24 = vadd.f32 %v1118_v22, %v1091_v18  ;;  %v1156_v25 = vadd.f32 %v1118_v22, %v1092_v60  ;;  %v3264_v22 = vld [vmem:[#allocation13 + $0x48] sm:$0xff]  }
 0x6d1   : > { %v1069_v26 = vpop.permute.xlu1 %1068 }
 0x6d2   : > { %v1171_v32 = vpack.c.bf16 %v1157_v19, %v1155_v24  ;;  %v1172_v10 = vpack.c.bf16 %v1158_v13, %v1156_v25  ;;  %v1097_v11 = vmul.f32 %v1069_v26, %v4258_v34  ;;  %v1098_v20 = vmul.f32 %v1069_v26, %v4261_v35 }
 0x6d4   : > { %1443 = vmatprep.subr.bf16.mxu0 %v1172_v10  ;;  %3103 = vmatprep.subr.bf16.mxu1 %v1172_v10  ;;  %v1161_v33 = vadd.f32 %v1133_v3, %v1097_v11  ;;  %v1162_v36 = vadd.f32 %v1133_v3, %v1098_v20  ;;  %v3267_v3 = vld [vmem:[#allocation13 + $0x28] sm:$0xff]  }
 0x6d5   : > { %1444 = vmatpush1.bf16.msra.mxu0 %v1171_v32  ;;  %3107 = vmatpush1.bf16.msra.mxu1 %v1171_v32  ;;  %v1064_v23 = vpop.permute.xlu1 %1063 }
 0x6d6   : > { %v1095_v30 = vmul.f32 %v1064_v23, %v4268_v38  ;;  %v1096_v31 = vmul.f32 %v1064_v23, %v4271_v39 }
 0x6d8   : > { %v1159_v5 = vadd.f32 %v1128_v46, %v1095_v30  ;;  %v1160_v6 = vadd.f32 %v1128_v46, %v1096_v31  ;;  %v3266_v46 = vld [vmem:[#allocation13 + $0x50] sm:$0xff]  }
 0x6d9   : > { %v1079_v37 = vpop.permute.xlu1 %1078  ;;  %v1084_v41 = vpop.permute.xlu0 %1083 }
 0x6da   : > { %v1173_v7 = vpack.c.bf16 %v1161_v33, %v1159_v5  ;;  %v1174_v9 = vpack.c.bf16 %v1162_v36, %v1160_v6  ;;  %v1101_v34 = vmul.f32 %v1079_v37, %v4278_v42  ;;  %v1102_v40 = vmul.f32 %v1079_v37, %v4281_v47 }
 0x6db   : > { %v1103_v42 = vmul.f32 %v1084_v41, %v4298_v54  ;;  %v1104_v52 = vmul.f32 %v1084_v41, %v4301_v56  ;;  %v3257_v54 = vld [vmem:[#allocation13] sm:$0xff]   ;;  %v3259_v56 = vld [vmem:[#allocation13 + $0x8] sm:$0xff]  }
 0x6dc   : > { %1445 = vmatprep.subr.bf16.mxu0 %v1174_v9  ;;  %3104 = vmatprep.subr.bf16.mxu1 %v1174_v9  ;;  %v1165_v1 = vadd.f32 %v1143_v4, %v1101_v34  ;;  %v1166_v2 = vadd.f32 %v1143_v4, %v1102_v40 }
 0x6dd   : > { %v1074_v35 = vpop.permute.xlu1 %1073  ;;  %1446 = vmatpush1.bf16.msra.mxu0 %v1173_v7  ;;  %3108 = vmatpush1.bf16.msra.mxu1 %v1173_v7  ;;  %v1148_v47 = vpop.permute.xlu0 %1147 }
 0x6de   : > { %v1099_v38 = vmul.f32 %v1074_v35, %v4288_v50  ;;  %v1100_v39 = vmul.f32 %v1074_v35, %v4291_v51  ;;  %v1167_v51 = vadd.f32 %v1148_v47, %v1103_v42  ;;  %v1168_v29 = vadd.f32 %v1148_v47, %v1104_v52 }
 0x6e0   : > { %v1163_v48 = vadd.f32 %v1138_v55, %v1099_v38  ;;  %v1164_v49 = vadd.f32 %v1138_v55, %v1100_v39  ;;  %v3268_v55 = vld [vmem:[#allocation13 + $0x58] sm:$0xff]  }
 0x6e1   : > { %v1089_v14 = vpop.permute.xlu1 %1088  ;;  %v1230_v4 = vpop.permute.xlu0 %1229 }
 0x6e2   : > { %v1175_v15 = vpack.c.bf16 %v1165_v1, %v1163_v48  ;;  %v1176_v27 = vpack.c.bf16 %v1166_v2, %v1164_v49  ;;  %v1105_v53 = vmul.f32 %v1089_v14, %v4308_v62  ;;  %v1106_v28 = vmul.f32 %v1089_v14, %v4311_v63  ;;  %v3260_v62 = vld [vmem:[#allocation13 + $0x38] sm:$0xff]   ;;  %v3261_v63 = vld [vmem:[#allocation13 + $0x10] sm:$0xff]  }
 0x6e4   : > { %1447 = vmatprep.subr.bf16.mxu0 %v1176_v27  ;;  %3105 = vmatprep.subr.bf16.mxu1 %v1176_v27 }
 0x6e5   : > { %1448 = vmatpush1.bf16.msra.mxu0 %v1175_v15  ;;  %3109 = vmatpush1.bf16.msra.mxu1 %v1175_v15  ;;  %v1153_v50 = vpop.permute.xlu1 %1152  ;;  %v1240_v8 = vpop.permute.xlu0 %1239 }
 0x6e6   : > { %v1169_v16 = vadd.f32 %v1153_v50, %v1105_v53  ;;  %v1170_v17 = vadd.f32 %v1153_v50, %v1106_v28 }
 0x6e8   : > { %v1177_v57 = vpack.c.bf16 %v1169_v16, %v1167_v51  ;;  %v1178_v61 = vpack.c.bf16 %v1170_v17, %v1168_v29 }
 0x6e9   : > { %v1235_v58 = vpop.permute.xlu1 %1234  ;;  %v4377_v12 = vpop.permute.xlu0 %1249 }
 0x6ea   : > { %1449 = vmatprep.subr.bf16.mxu0 %v1178_v61  ;;  %3106 = vmatprep.subr.bf16.mxu1 %v1178_v61 }
 0x6eb   : > { %1450 = vmatpush1.bf16.msra.mxu0 %v1177_v57  ;;  %3110 = vmatpush1.bf16.msra.mxu1 %v1177_v57 }
 0x6ed   : > { %v1245_v59 = vpop.permute.xlu1 %1244  ;;  %v4381_v60 = vpop.permute.xlu0 %1259 }
 0x6ee   : > { %2857 = vmatmul.mubr.msk.bf16.vlgmr.msra.gmra.mrb[12].mxu0 %vm472_vm7, %v3257_v54  ;;  %2863 = vmatmul.mubr.msk.bf16.vlgmr.msra.gmra.mrb[12].mxu1 %vm472_vm7, %v3258_v44 }
 0x6ef   : > { %1485 = vmatprep.mubr.bf16.mxu0 %v5091_v43  ;;  %1545 = vmatprep.mubr.bf16.mxu1 %v5091_v43 }
 0x6f1   : > { %v4379_v18 = vpop.permute.xlu1 %1254  ;;  %v4385_v13 = vpop.permute.xlu0 %1269 }
 0x6f5   : > { %v4383_v19 = vpop.permute.xlu1 %1264  ;;  %v4389_v25 = vpop.permute.xlu0 %1279 }
 0x6f6   : > { %2858 = vmatmul.mubr.msk.bf16.gmra.mrb[16].mxu0 %vm472_vm7, %v3259_v56  ;;  %2864 = vmatmul.mubr.msk.bf16.gmra.mrb[16].mxu1 %vm472_vm7, %v3260_v62 }
 0x6f7   : > { %1495 = vmatprep.mubr.bf16.mxu0 %v5091_v43  ;;  %1555 = vmatprep.mubr.bf16.mxu1 %v5091_v43 }
 0x6f9   : > { %v4387_v24 = vpop.permute.xlu1 %1274  ;;  %v1290_v32 = vpop.permute.xlu0 %1289 }
 0x6fd   : > { %v4391_v26 = vpop.permute.xlu1 %1284  ;;  %v1300_v48 = vpop.permute.xlu0 %1299 }
 0x6fe   : > { %2859 = vmatmul.mubr.msk.bf16.gmra.mrb[20].mxu0 %vm472_vm7, %v3261_v63  ;;  %2865 = vmatmul.mubr.msk.bf16.gmra.mrb[20].mxu1 %vm472_vm7, %v3262_v21 }
 0x6ff   : > { %1505 = vmatprep.mubr.bf16.mxu0 %v5091_v43  ;;  %1565 = vmatprep.mubr.bf16.mxu1 %v5091_v43 }
 0x701   : > { %v1295_v10 = vpop.permute.xlu1 %1294  ;;  %v1310_v21 = vpop.permute.xlu0 %1309 }
 0x705   : > { %v1305_v49 = vpop.permute.xlu1 %1304 }
 0x706   : > { %2860 = vmatmul.mubr.msk.bf16.gmra.mrb[24].mxu0 %vm472_vm7, %v3263_v45  ;;  %2866 = vmatmul.mubr.msk.bf16.gmra.mrb[24].mxu1 %vm472_vm7, %v3264_v22 }
 0x707   : > { %1515 = vmatprep.mubr.bf16.mxu0 %v5091_v43  ;;  %1575 = vmatprep.mubr.bf16.mxu1 %v5091_v43 }
 0x709   : > { %v1315_v45 = vpop.permute.xlu1 %1314 }
 0x70e   : > { %2861 = vmatmul.mubr.msk.bf16.gmra.mrb[28].mxu0 %vm472_vm7, %v3265_v0  ;;  %2867 = vmatmul.mubr.msk.bf16.gmra.mrb[28].mxu1 %vm472_vm7, %v3266_v46 }
 0x70f   : > { %1525 = vmatprep.mubr.bf16.mxu0 %v5091_v43  ;;  %1585 = vmatprep.mubr.bf16.mxu1 %v5091_v43 }
 0x716   : > { %2862 = vmatmul.mubr.msk.bf16.gmra.mrb[32].mxu0 %vm472_vm7, %v3267_v3  ;;  %2868 = vmatmul.mubr.msk.bf16.gmra.mrb[32].mxu1 %vm472_vm7, %v3268_v55 }
 0x7c1   : > { %v1477_v11 = vpop.f32.mrb[12].mxu0  ;;  %v1537_v20 = vpop.f32.mrb[12].mxu1 }
 0x7c2   : > { %v1479_v23 = vpop.f32.mrb[13].mxu0  ;;  %v1539_v30 = vpop.f32.mrb[13].mxu1  ;;  %v1478_v5 = vadd.f32 %v1477_v11, %v1230_v4  ;;  %v1538_v6 = vadd.f32 %v1537_v20, %v1290_v32 }
 0x7c3   : > { %v1481_v31 = vpop.f32.mrb[14].mxu0  ;;  %v1541_v33 = vpop.f32.mrb[14].mxu1  ;;  %v1480_v34 = vadd.f32 %v1479_v23, %v1230_v4  ;;  %v1540_v40 = vadd.f32 %v1539_v30, %v1290_v32 }
 0x7c4   : > { %v1482_v36 = vadd.f32 %v1481_v31, %v1235_v58  ;;  %v1542_v37 = vadd.f32 %v1541_v33, %v1295_v10  ;;  %v1483_v7 = vpop.f32.mrb[15].mxu0  ;;  %v1543_v9 = vpop.f32.mrb[15].mxu1 }
 0x7c5   : > { %v1484_v41 = vadd.f32 %v1483_v7, %v1235_v58  ;;  %v1544_v35 = vadd.f32 %v1543_v9, %v1295_v10  ;;  %v1325_v7 = vpop.permute.xlu1 %1324 }
 0x7c6   : > { %v1596_v38 = vpack.c.bf16 %v1482_v36, %v1478_v5  ;;  %v1608_v39 = vpack.c.bf16 %v1542_v37, %v1538_v6  ;;  %v1320_v37 = vpop.permute.xlu0 %1319 }
 0x7c7   : > { %v1597_v1 = vpack.c.bf16 %v1484_v41, %v1480_v34  ;;  %v1609_v2 = vpack.c.bf16 %v1544_v35, %v1540_v40 }
 0x7c8   : > { %1620 = vst [vmem:[#allocation2] sm:$0xff] %v1596_v38  ;;  %1632 = vst [vmem:[#allocation2 + $0x60] sm:$0xff] %v1608_v39 }
 0x7c9   : > { %1621 = vst [vmem:[#allocation2 + $0x8] sm:$0xff] %v1597_v1  ;;  %1633 = vst [vmem:[#allocation2 + $0x68] sm:$0xff] %v1609_v2  ;;  %v1487_v14 = vpop.f32.mrb[16].mxu0  ;;  %v1547_v15 = vpop.f32.mrb[16].mxu1 }
 0x7ca   : > { %v1489_v27 = vpop.f32.mrb[17].mxu0  ;;  %v1549_v42 = vpop.f32.mrb[17].mxu1  ;;  %v1488_v53 = vadd.f32 %v1487_v14, %v1240_v8  ;;  %v1548_v28 = vadd.f32 %v1547_v15, %v1300_v48 }
 0x7cb   : > { %v1491_v47 = vpop.f32.mrb[18].mxu0  ;;  %v1551_v52 = vpop.f32.mrb[18].mxu1  ;;  %v1490_v17 = vadd.f32 %v1489_v27, %v1240_v8  ;;  %v1550_v57 = vadd.f32 %v1549_v42, %v1300_v48 }
 0x7cc   : > { %v1492_v50 = vadd.f32 %v1491_v47, %v1245_v59  ;;  %v1552_v51 = vadd.f32 %v1551_v52, %v1305_v49  ;;  %v1493_v29 = vpop.f32.mrb[19].mxu0  ;;  %v1553_v16 = vpop.f32.mrb[19].mxu1 }
 0x7cd   : > { %v1494_v61 = vadd.f32 %v1493_v29, %v1245_v59  ;;  %v1554_v54 = vadd.f32 %v1553_v16, %v1305_v49 }
 0x7ce   : > { %v1598_v44 = vpack.c.bf16 %v1492_v50, %v1488_v53  ;;  %v1610_v56 = vpack.c.bf16 %v1552_v51, %v1548_v28  ;;  %v1330_v28 = vpop.permute.xlu0 %1329  ;;  %v1335_v50 = vpop.permute.xlu1 %1334 }
 0x7cf   : > { %v1599_v62 = vpack.c.bf16 %v1494_v61, %v1490_v17  ;;  %v1611_v63 = vpack.c.bf16 %v1554_v54, %v1550_v57 }
 0x7d0   : > { %1622 = vst [vmem:[#allocation2 + $0x10] sm:$0xff] %v1598_v44  ;;  %1634 = vst [vmem:[#allocation2 + $0x70] sm:$0xff] %v1610_v56 }
 0x7d1   : > { %1623 = vst [vmem:[#allocation2 + $0x18] sm:$0xff] %v1599_v62  ;;  %1635 = vst [vmem:[#allocation2 + $0x78] sm:$0xff] %v1611_v63  ;;  %v1497_v22 = vpop.f32.mrb[20].mxu0  ;;  %v1557_v0 = vpop.f32.mrb[20].mxu1 }
 0x7d2   : > { %v1499_v46 = vpop.f32.mrb[21].mxu0  ;;  %v1559_v3 = vpop.f32.mrb[21].mxu1  ;;  %v1498_v58 = vadd.f32 %v1497_v22, %v4377_v12  ;;  %v1558_v8 = vadd.f32 %v1557_v0, %v1310_v21 }
 0x7d3   : > { %v1501_v55 = vpop.f32.mrb[22].mxu0  ;;  %v1561_v4 = vpop.f32.mrb[22].mxu1  ;;  %v1500_v20 = vadd.f32 %v1499_v46, %v4377_v12  ;;  %v1560_v23 = vadd.f32 %v1559_v3, %v1310_v21 }
 0x7d4   : > { %v1502_v59 = vadd.f32 %v1501_v55, %v4379_v18  ;;  %v1562_v32 = vadd.f32 %v1561_v4, %v1315_v45  ;;  %v1503_v10 = vpop.f32.mrb[23].mxu0  ;;  %v1563_v11 = vpop.f32.mrb[23].mxu1 }
 0x7d5   : > { %v1504_v30 = vadd.f32 %v1503_v10, %v4379_v18  ;;  %v1564_v31 = vadd.f32 %v1563_v11, %v1315_v45  ;;  %v1340_v4 = vpop.permute.xlu0 %1339 }
 0x7d6   : > { %v1600_v33 = vpack.c.bf16 %v1502_v59, %v1498_v58  ;;  %v1612_v5 = vpack.c.bf16 %v1562_v32, %v1558_v8  ;;  %v1345_v58 = vpop.permute.xlu1 %1344 }
 0x7d7   : > { %v1601_v6 = vpack.c.bf16 %v1504_v30, %v1500_v20  ;;  %v1613_v36 = vpack.c.bf16 %v1564_v31, %v1560_v23 }
 0x7d8   : > { %1624 = vst [vmem:[#allocation2 + $0x20] sm:$0xff] %v1600_v33  ;;  %1636 = vst [vmem:[#allocation2 + $0x80] sm:$0xff] %v1612_v5 }
 0x7d9   : > { %1625 = vst [vmem:[#allocation2 + $0x28] sm:$0xff] %v1601_v6  ;;  %1637 = vst [vmem:[#allocation2 + $0x88] sm:$0xff] %v1613_v36  ;;  %v1507_v9 = vpop.f32.mrb[24].mxu0  ;;  %v1567_v34 = vpop.f32.mrb[24].mxu1 }
 0x7da   : > { %v1509_v40 = vpop.f32.mrb[25].mxu0  ;;  %v1569_v41 = vpop.f32.mrb[25].mxu1  ;;  %v1508_v38 = vadd.f32 %v1507_v9, %v4381_v60  ;;  %v1568_v18 = vadd.f32 %v1567_v34, %v1320_v37 }
 0x7db   : > { %v1511_v35 = vpop.f32.mrb[26].mxu0  ;;  %v1571_v12 = vpop.f32.mrb[26].mxu1  ;;  %v1510_v49 = vadd.f32 %v1509_v40, %v4381_v60  ;;  %v1570_v14 = vadd.f32 %v1569_v41, %v1320_v37 }
 0x7dc   : > { %v1512_v39 = vadd.f32 %v1511_v35, %v4383_v19  ;;  %v1572_v1 = vadd.f32 %v1571_v12, %v1325_v7  ;;  %v1513_v2 = vpop.f32.mrb[27].mxu0  ;;  %v1573_v48 = vpop.f32.mrb[27].mxu1 }
 0x7dd   : > { %v1514_v15 = vadd.f32 %v1513_v2, %v4383_v19  ;;  %v1574_v27 = vadd.f32 %v1573_v48, %v1325_v7 }
 0x7de   : > { %v1602_v42 = vpack.c.bf16 %v1512_v39, %v1508_v38  ;;  %v1614_v47 = vpack.c.bf16 %v1572_v1, %v1568_v18 }
 0x7df   : > { %v1603_v52 = vpack.c.bf16 %v1514_v15, %v1510_v49  ;;  %v1615_v53 = vpack.c.bf16 %v1574_v27, %v1570_v14 }
 0x7e0   : > { %1626 = vst [vmem:[#allocation2 + $0x30] sm:$0xff] %v1602_v42  ;;  %1638 = vst [vmem:[#allocation2 + $0x90] sm:$0xff] %v1614_v47 }
 0x7e1   : > { %1627 = vst [vmem:[#allocation2 + $0x38] sm:$0xff] %v1603_v52  ;;  %1639 = vst [vmem:[#allocation2 + $0x98] sm:$0xff] %v1615_v53  ;;  %v1517_v51 = vpop.f32.mrb[28].mxu0  ;;  %v1577_v29 = vpop.f32.mrb[28].mxu1 }
 0x7e2   : > { %v1519_v16 = vpop.f32.mrb[29].mxu0  ;;  %v1579_v17 = vpop.f32.mrb[29].mxu1  ;;  %v1518_v61 = vadd.f32 %v1517_v51, %v4385_v13  ;;  %v1578_v19 = vadd.f32 %v1577_v29, %v1330_v28 }
 0x7e3   : > { %v1521_v57 = vpop.f32.mrb[30].mxu0  ;;  %v1581_v60 = vpop.f32.mrb[30].mxu1  ;;  %v1520_v63 = vadd.f32 %v1519_v16, %v4385_v13  ;;  %v1580_v21 = vadd.f32 %v1579_v17, %v1330_v28 }
 0x7e4   : > { %v1522_v54 = vadd.f32 %v1521_v57, %v4387_v24  ;;  %v1582_v44 = vadd.f32 %v1581_v60, %v1335_v50  ;;  %v1523_v56 = vpop.f32.mrb[31].mxu0  ;;  %v1583_v62 = vpop.f32.mrb[31].mxu1 }
 0x7e5   : > { %v1524_v45 = vadd.f32 %v1523_v56, %v4387_v24  ;;  %v1584_v22 = vadd.f32 %v1583_v62, %v1335_v50 }
 0x7e6   : > { %v1604_v0 = vpack.c.bf16 %v1522_v54, %v1518_v61  ;;  %v1616_v46 = vpack.c.bf16 %v1582_v44, %v1578_v19 }
 0x7e7   : > { %v1605_v3 = vpack.c.bf16 %v1524_v45, %v1520_v63  ;;  %v1617_v55 = vpack.c.bf16 %v1584_v22, %v1580_v21 }
 0x7e8   : > { %1628 = vst [vmem:[#allocation2 + $0x40] sm:$0xff] %v1604_v0  ;;  %1640 = vst [vmem:[#allocation2 + $0xa0] sm:$0xff] %v1616_v46 }
 0x7e9   : > { %1629 = vst [vmem:[#allocation2 + $0x48] sm:$0xff] %v1605_v3  ;;  %1641 = vst [vmem:[#allocation2 + $0xa8] sm:$0xff] %v1617_v55  ;;  %v1527_v8 = vpop.f32.mrb[32].mxu0  ;;  %v1587_v59 = vpop.f32.mrb[32].mxu1 }
 0x7ea   : > { %v1529_v32 = vpop.f32.mrb[33].mxu0  ;;  %v1589_v10 = vpop.f32.mrb[33].mxu1  ;;  %v1528_v20 = vadd.f32 %v1527_v8, %v4389_v25  ;;  %v1588_v24 = vadd.f32 %v1587_v59, %v1340_v4 }
 0x7eb   : > { %v1531_v11 = vpop.f32.mrb[34].mxu0  ;;  %v1591_v13 = vpop.f32.mrb[34].mxu1  ;;  %v1530_v5 = vadd.f32 %v1529_v32, %v4389_v25  ;;  %v1590_v6 = vadd.f32 %v1589_v10, %v1340_v4 }
 0x7ec   : > { %v1532_v23 = vadd.f32 %v1531_v11, %v4391_v26  ;;  %v1592_v30 = vadd.f32 %v1591_v13, %v1345_v58  ;;  %v1533_v31 = vpop.f32.mrb[35].mxu0  ;;  %v1593_v33 = vpop.f32.mrb[35].mxu1 }
 0x7ed   : > { %v1534_v36 = vadd.f32 %v1533_v31, %v4391_v26  ;;  %v1594_v37 = vadd.f32 %v1593_v33, %v1345_v58 }
 0x7ee   : > { %v1606_v7 = vpack.c.bf16 %v1532_v23, %v1528_v20  ;;  %v1618_v9 = vpack.c.bf16 %v1592_v30, %v1588_v24 }
 0x7ef   : > { %v1607_v34 = vpack.c.bf16 %v1534_v36, %v1530_v5  ;;  %v1619_v40 = vpack.c.bf16 %v1594_v37, %v1590_v6 }
 0x7f0   : > { %1630 = vst [vmem:[#allocation2 + $0x50] sm:$0xff] %v1606_v7  ;;  %1642 = vst [vmem:[#allocation2 + $0xb0] sm:$0xff] %v1618_v9 }
 0x7f1   : > { %1631 = vst [vmem:[#allocation2 + $0x58] sm:$0xff] %v1607_v34  ;;  %1643 = vst [vmem:[#allocation2 + $0xb8] sm:$0xff] %v1619_v40 }
 0x7f2 LB: >> { %v3760_v25 = vmov 0   ;;  %s1660_s14 = smul.u32 96, %s3743_s2  ;;  %s3743_s2 = sphi %s4413_s2, %s1659_s2  }
 0x7f3   : >> { %1827 = vmatprep.mubr.bf16.mxu0 %v3760_v25 }
 0x7f4   : >> { %s1705_s17 = sadd.s32 32, %s1660_s14  ;;  %s1661_s20 = sadd.s32 64, %s1660_s14 }
 0x7f5   : >> { %s1706_s10 = sshra.s32 %s1705_s17, 4  ;;  %s1662_s26 = sshra.s32 %s1661_s20, 4 }
 0x7f6   : >> { %s2920_s19 = sshll.u32 %s1706_s10, 4  ;;  %s2918_s21 = sshll.u32 %s1662_s26, 4 }
 0x7f7   : >> { %s1710_s15 = scalar_lea.vmem [#allocation2], %s2920_s19  ;;  %s1666_s9 = scalar_lea.vmem [#allocation2], %s2918_s21 }
 0x7f8   : >> { %v1711_v26 = vld [vmem:[%s1710_s15] sm:$0xff]  ;;  %s1695_s22 = sshra.s32 %s1660_s14, 4  ;;  %v3280_v12 = vld [vmem:[%s1666_s9 + $0x10] ss:$8 sps:$4 sm:$0xff]   ;;  %v3282_v38 = vld [vmem:[%s1666_s9 + $0x14] ss:$8 sps:$4 sm:$0xff]  }
 0x7f9   : >> { %1715 = vxpose.xlu0.c.b16.start [1/2] (short) %v1711_v26, 128  ;;  %v4420_v41 = vld [vmem:[%s1666_s9] ss:$8 sps:$4 sm:$0xff]   ;;  %s2919_s25 = sshll.u32 %s1695_s22, 4  ;;  %v4422_v35 = vld [vmem:[%s1666_s9 + $0x4] ss:$8 sps:$4 sm:$0xff]   ;;  %v1713_v18 = vld [vmem:[%s1710_s15 + $0x10] sm:$0xff] }
 0x7fa   : >> { %1691 = vst [vmem:[#allocation4] sm:$0xff] %v4420_v41  ;;  %v1712_v39 = vld [vmem:[%s1710_s15 + $0x8] sm:$0xff]  ;;  %1692 = vst [vmem:[#allocation4 + $0x8] sm:$0xff] %v4422_v35  ;;  %s1700_s17 = scalar_lea.vmem [#allocation2], %s2919_s25  ;;  %v1714_v49 = vld [vmem:[%s1710_s15 + $0x18] sm:$0xff]  ;;  %s2901_s14 = sshll.u32 %s3743_s2, 5 }
 0x7fb   : >> { %1693 = vst [vmem:[#allocation4 + $0x10] sm:$0xff] %v3280_v12  ;;  %1694 = vst [vmem:[#allocation4 + $0x18] sm:$0xff] %v3282_v38  ;;  %1731 = vxpose.xlu1.c.b16.start [1/2] (short) %v1712_v39, 128  ;;  %v1702_v1 = vld [vmem:[%s1700_s17 + $0x8] sm:$0xff]  ;;  %v1701_v2 = vld [vmem:[%s1700_s17] sm:$0xff]  ;;  %s2407_s20 = scalar_lea.vmem [#allocation3], %s2901_s14  ;;  %s1659_s2 = sadd.s32 1, %s3743_s2  }
 0x7fc   : >> { %v1704_v48 = vld [vmem:[%s1700_s17 + $0x18] sm:$0xff]  ;;  %1795 = vmatprep.subr.bf16.mxu0 %v1702_v1  ;;  %v1703_v14 = vld [vmem:[%s1700_s17 + $0x10] sm:$0xff]  ;;  %p1656_p12 = scmp.ge.s32.totalorder %s1659_s2, 2  }
 0x7fd   : >> { %1716 = vxpose.xlu0.c.b16.end [2/2] (short) %v1713_v18, 128  ;;  %1796 = vmatpush1.bf16.msra.mxu0 %v1701_v2  ;;  %s2922_s2 = sshll.u32 (%p1656_p12), %s3830_s11, 11  ;;  %s2643_s10 = sshll.u32 (%p1656_p12), %s4411_s12, 4  ;;  %s5027_s10 = int_to_ptr.vmem [resolvable:$true] %s2643_s10 }
 0x7fe   : >> { %1797 = vmatprep.subr.bf16.mxu0 %v1704_v48  ;;  %s5025_s19 = scalar_lea.hbm (%p1656_p12), %s5085_s8, %s2922_s2  ;;  %s3653_s21 = scalar_lea.vmem (%p1656_p12), %s5027_s10, 2048 }
 0x7ff   : >> { %1732 = vxpose.xlu1.c.b16.end [2/2] (short) %v1714_v49, 128  ;;  %p3654_p1 = scmp.ne.s32.totalorder (%p1656_p12), %s5027_s10, %s3653_s21  ;;  %p5279_p13 = scmp.ne.s32.totalorder (%p1656_p12), %s5152_s24, 0 }
 0x800   : > { %s3761_s15 = smov (%p1656_p12), [#allocation19]  }
 0x801   : >> { %1798 = vmatpush1.bf16.msra.mxu0 %v1703_v14  ;;  %p3655_p0 = pnand (%p1656_p12), %p3654_p1, %p5279_p13  ;;  %s3657_s9 = sshll.u32 (%p1656_p12), %s3761_s15, 4  ;;  %s3658_s9 = int_to_ptr.vmem [resolvable:$false] %s3657_s9 }
 0x802   : > { %s3659_s22 = scalar_lea.vmem (%p1656_p12), %s3658_s9, 4096  ;;  %p3660_p8 = scmp.lt.s32.totalorder (%p1656_p12), %s5027_s10, %s3658_s9 }
 0x803   : > { %p3656_p2 = pneg (%p1656_p12), %p3655_p0  ;;  %p3661_p6 = scmp.lt.s32.totalorder (%p1656_p12), %s3659_s22, %s3653_s21 }
 0x805   : > { %p3662_p10 = por (%p1656_p12), %p3661_p6, %p3660_p8 }
 0x807   : > { %p3663_p11 = pnand (%p1656_p12), %p3662_p10, %p3656_p2 }
 0x85f   : >> { %v1723_v15 = vpop.trf.xlu0 }
 0x860   : >> { %2879 = vmatmul.mubr.msk.bf16.vlgmr.msra.gmra.mrb[0].mxu0 %vm607_vm8, %v1723_v15 }
 0x861   : >> { %1837 = vmatprep.mubr.bf16.mxu0 %v3760_v25  ;;  %v1739_v51 = vpop.trf.xlu1 }
 0x863   : >> { %v1724_v27 = vpop.trf.xlu0 }
 0x865   : >> { %v1740_v29 = vpop.trf.xlu1 }
 0x867   : >> { %v1725_v42 = vpop.trf.xlu0 }
 0x868   : >> { %2880 = vmatmul.mubr.msk.bf16.gmra.mrb[4].mxu0 %vm607_vm8, %v1724_v27 }
 0x869   : >> { %1847 = vmatprep.mubr.bf16.mxu0 %v3760_v25  ;;  %v1741_v16 = vpop.trf.xlu1 }
 0x86b   : >> { %v1726_v47 = vpop.trf.xlu0 }
 0x86d   : >> { %v1742_v17 = vpop.trf.xlu1 }
 0x86f   : >> { %v1727_v52 = vpop.trf.xlu0 }
 0x870   : >> { %2881 = vmatmul.mubr.msk.bf16.gmra.mrb[8].mxu0 %vm607_vm8, %v1725_v42 }
 0x871   : >> { %1857 = vmatprep.mubr.bf16.mxu0 %v3760_v25  ;;  %v1743_v57 = vpop.trf.xlu1 }
 0x873   : >> { %v1728_v53 = vpop.trf.xlu0 }
 0x875   : >> { %v1744_v60 = vpop.trf.xlu1 }
 0x877   : >> { %v1729_v28 = vpop.trf.xlu0 }
 0x878   : >> { %2882 = vmatmul.mubr.msk.bf16.gmra.mrb[12].mxu0 %vm607_vm8, %v1726_v47 }
 0x879   : >> { %1867 = vmatprep.mubr.bf16.mxu0 %v3760_v25  ;;  %v1745_v61 = vpop.trf.xlu1 }
 0x87b   : >> { %v1730_v50 = vpop.trf.xlu0 }
 0x87d   : >> { %v1746_v19 = vpop.trf.xlu1 }
 0x880   : >> { %2883 = vmatmul.mubr.msk.bf16.gmra.mrb[16].mxu0 %vm607_vm8, %v1727_v52 }
 0x881   : >> { %1877 = vmatprep.mubr.bf16.mxu0 %v3760_v25 }
 0x888   : >> { %2884 = vmatmul.mubr.msk.bf16.gmra.mrb[20].mxu0 %vm607_vm8, %v1728_v53 }
 0x889   : >> { %1887 = vmatprep.mubr.bf16.mxu0 %v3760_v25 }
 0x890   : >> { %2885 = vmatmul.mubr.msk.bf16.gmra.mrb[24].mxu0 %vm607_vm8, %v1729_v28 }
 0x891   : >> { %1897 = vmatprep.mubr.bf16.mxu0 %v3760_v25 }
 0x898   : >> { %2886 = vmatmul.mubr.msk.bf16.gmra.mrb[28].mxu0 %vm607_vm8, %v1730_v50 }
 0x899   : >> { %1907 = vmatprep.mubr.bf16.mxu0 %v3760_v25 }
 0x8a0   : >> { %2887 = vmatmul.mubr.msk.bf16.gmra.mrb[32].mxu0 %vm607_vm8, %v1739_v51 }
 0x8a1   : >> { %1917 = vmatprep.mubr.bf16.mxu0 %v3760_v25 }
 0x8a8   : >> { %2888 = vmatmul.mubr.msk.bf16.gmra.mrb[36].mxu0 %vm607_vm8, %v1740_v29 }
 0x8a9   : >> { %1927 = vmatprep.mubr.bf16.mxu0 %v3760_v25 }
 0x8b0   : >> { %2889 = vmatmul.mubr.msk.bf16.gmra.mrb[40].mxu0 %vm607_vm8, %v1741_v16 }
 0x8b1   : >> { %1937 = vmatprep.mubr.bf16.mxu0 %v3760_v25 }
 0x8b8   : >> { %2890 = vmatmul.mubr.msk.bf16.gmra.mrb[44].mxu0 %vm607_vm8, %v1742_v17 }
 0x8b9   : >> { %1947 = vmatprep.mubr.bf16.mxu0 %v3760_v25 }
 0x8c0   : >> { %2891 = vmatmul.mubr.msk.bf16.gmra.mrb[48].mxu0 %vm607_vm8, %v1743_v57 }
 0x8c1   : >> { %1957 = vmatprep.mubr.bf16.mxu0 %v3760_v25 }
 0x8c8   : >> { %2892 = vmatmul.mubr.msk.bf16.gmra.mrb[52].mxu0 %vm607_vm8, %v1744_v60 }
 0x8c9   : >> { %1967 = vmatprep.mubr.bf16.mxu0 %v3760_v25 }
 0x8d0   : >> { %2893 = vmatmul.mubr.msk.bf16.gmra.mrb[56].mxu0 %vm607_vm8, %v1745_v61 }
 0x8d1   : >> { %1977 = vmatprep.mubr.bf16.mxu0 %v3760_v25 }
 0x8d8   : >> { %2894 = vmatmul.mubr.msk.bf16.gmra.mrb[60].mxu0 %vm607_vm8, %v1746_v19 }
 0x933   : >> { %v4457_v54 = vpop.f32.mrb[0].mxu0 }
 0x934   : >> { %v4459_v44 = vpop.f32.mrb[1].mxu0 }
 0x935   : >> { %v4461_v56 = vpop.f32.mrb[2].mxu0 }
 0x936   : >> { %v4463_v62 = vpop.f32.mrb[3].mxu0 }
 0x93b   : >> { %v4465_v63 = vpop.f32.mrb[4].mxu0 }
 0x93c   : >> { %v1988_v21 = vmax.f32 %v4457_v54, %v4465_v63  ;;  %v4469_v45 = vpop.f32.mrb[5].mxu0 }
 0x93d   : >> { %v2025_v22 = vmax.f32 %v4459_v44, %v4469_v45  ;;  %v4473_v0 = vpop.f32.mrb[6].mxu0 }
 0x93e   : >> { %v1989_v46 = vmax.f32 %v4461_v56, %v4473_v0  ;;  %v4477_v3 = vpop.f32.mrb[7].mxu0 }
 0x93f   : >> { %v2026_v55 = vmax.f32 %v4463_v62, %v4477_v3 }
 0x943   : >> { %v4481_v4 = vpop.f32.mrb[8].mxu0 }
 0x944   : >> { %v1990_v58 = vmax.f32 %v1988_v21, %v4481_v4  ;;  %v4484_v8 = vpop.f32.mrb[9].mxu0 }
 0x945   : >> { %v2027_v59 = vmax.f32 %v2025_v22, %v4484_v8  ;;  %v4487_v32 = vpop.f32.mrb[10].mxu0 }
 0x946   : >> { %v1991_v10 = vmax.f32 %v1989_v46, %v4487_v32  ;;  %v4490_v11 = vpop.f32.mrb[11].mxu0 }
 0x947   : >> { %v2028_v13 = vmax.f32 %v2026_v55, %v4490_v11 }
 0x94b   : >> { %v4493_v20 = vpop.f32.mrb[12].mxu0 }
 0x94c   : >> { %v1992_v24 = vmax.f32 %v1990_v58, %v4493_v20  ;;  %v4496_v23 = vpop.f32.mrb[13].mxu0 }
 0x94d   : >> { %v2029_v30 = vmax.f32 %v2027_v59, %v4496_v23  ;;  %v4499_v31 = vpop.f32.mrb[14].mxu0 }
 0x94e   : >> { %v1993_v33 = vmax.f32 %v1991_v10, %v4499_v31  ;;  %v4502_v5 = vpop.f32.mrb[15].mxu0 }
 0x94f   : >> { %v2030_v6 = vmax.f32 %v2028_v13, %v4502_v5 }
 0x953   : >> { %v4505_v36 = vpop.f32.mrb[16].mxu0 }
 0x954   : >> { %v1994_v37 = vmax.f32 %v1992_v24, %v4505_v36  ;;  %v4508_v7 = vpop.f32.mrb[17].mxu0 }
 0x955   : >> { %v2031_v9 = vmax.f32 %v2029_v30, %v4508_v7  ;;  %v4511_v34 = vpop.f32.mrb[18].mxu0 }
 0x956   : >> { %v1995_v40 = vmax.f32 %v1993_v33, %v4511_v34  ;;  %v4514_v25 = vpop.f32.mrb[19].mxu0 }
 0x957   : >> { %v2032_v26 = vmax.f32 %v2030_v6, %v4514_v25 }
 0x95b   : >> { %v4517_v12 = vpop.f32.mrb[20].mxu0 }
 0x95c   : >> { %v1996_v38 = vmax.f32 %v1994_v37, %v4517_v12  ;;  %v4520_v18 = vpop.f32.mrb[21].mxu0 }
 0x95d   : >> { %5164 = vst [vmem:[#allocation26_spill] sm:$0xff] %v4520_v18  ;;  %v2033_v39 = vmax.f32 %v2031_v9, %v4520_v18  ;;  %v4523_v1 = vpop.f32.mrb[22].mxu0 }
 0x95e   : >> { %v1997_v2 = vmax.f32 %v1995_v40, %v4523_v1  ;;  %v4526_v48 = vpop.f32.mrb[23].mxu0 }
 0x95f   : >> { %5165 = vst [vmem:[#allocation27_spill] sm:$0xff] %v4526_v48  ;;  %v2034_v49 = vmax.f32 %v2032_v26, %v4526_v48 }
 0x963   : >> { %v4529_v14 = vpop.f32.mrb[24].mxu0 }
 0x964   : >> { %v1998_v15 = vmax.f32 %v1996_v38, %v4529_v14  ;;  %v4532_v27 = vpop.f32.mrb[25].mxu0 }
 0x965   : >> { %5166 = vst [vmem:[#allocation28_spill] sm:$0xff] %v4532_v27  ;;  %v2035_v42 = vmax.f32 %v2033_v39, %v4532_v27  ;;  %v4535_v47 = vpop.f32.mrb[26].mxu0 }
 0x966   : >> { %v1999_v52 = vmax.f32 %v1997_v2, %v4535_v47  ;;  %v4538_v53 = vpop.f32.mrb[27].mxu0 }
 0x967   : >> { %5167 = vst [vmem:[#allocation29_spill] sm:$0xff] %v4538_v53  ;;  %v2036_v28 = vmax.f32 %v2034_v49, %v4538_v53 }
 0x96b   : >> { %v4541_v50 = vpop.f32.mrb[28].mxu0 }
 0x96c   : >> { %v2000_v51 = vmax.f32 %v1998_v15, %v4541_v50  ;;  %v4544_v29 = vpop.f32.mrb[29].mxu0 }
 0x96d   : >> { %5168 = vst [vmem:[#allocation30_spill] sm:$0xff] %v4544_v29  ;;  %v2037_v16 = vmax.f32 %v2035_v42, %v4544_v29  ;;  %v4547_v17 = vpop.f32.mrb[30].mxu0 }
 0x96e   : >> { %v2001_v57 = vmax.f32 %v1999_v52, %v4547_v17  ;;  %v4550_v60 = vpop.f32.mrb[31].mxu0 }
 0x96f   : >> { %5169 = vst [vmem:[#allocation31_spill] sm:$0xff] %v4550_v60  ;;  %v2038_v61 = vmax.f32 %v2036_v28, %v4550_v60 }
 0x973   : >> { %v4553_v19 = vpop.f32.mrb[32].mxu0 }
 0x974   : >> { %v2002_v21 = vmax.f32 %v2000_v51, %v4553_v19  ;;  %v4556_v22 = vpop.f32.mrb[33].mxu0 }
 0x975   : >> { %5170 = vst [vmem:[#allocation32_spill] sm:$0xff] %v4556_v22  ;;  %v2039_v46 = vmax.f32 %v2037_v16, %v4556_v22  ;;  %v4559_v55 = vpop.f32.mrb[34].mxu0 }
 0x976   : >> { %v2003_v58 = vmax.f32 %v2001_v57, %v4559_v55  ;;  %v4562_v59 = vpop.f32.mrb[35].mxu0 }
 0x977   : >> { %5171 = vst [vmem:[#allocation33_spill] sm:$0xff] %v4562_v59  ;;  %v2040_v10 = vmax.f32 %v2038_v61, %v4562_v59 }
 0x97b   : >> { %v4565_v13 = vpop.f32.mrb[36].mxu0 }
 0x97c   : >> { %v2004_v24 = vmax.f32 %v2002_v21, %v4565_v13  ;;  %v4568_v30 = vpop.f32.mrb[37].mxu0 }
 0x97d   : >> { %5172 = vst [vmem:[#allocation34_spill] sm:$0xff] %v4568_v30  ;;  %v2041_v33 = vmax.f32 %v2039_v46, %v4568_v30  ;;  %v4571_v6 = vpop.f32.mrb[38].mxu0 }
 0x97e   : >> { %v2005_v37 = vmax.f32 %v2003_v58, %v4571_v6  ;;  %v4574_v9 = vpop.f32.mrb[39].mxu0 }
 0x97f   : >> { %5173 = vst [vmem:[#allocation35_spill] sm:$0xff] %v4574_v9  ;;  %v2042_v40 = vmax.f32 %v2040_v10, %v4574_v9 }
 0x983   : >> { %v4577_v26 = vpop.f32.mrb[40].mxu0 }
 0x984   : >> { %v2006_v38 = vmax.f32 %v2004_v24, %v4577_v26  ;;  %v4580_v39 = vpop.f32.mrb[41].mxu0 }
 0x985   : >> { %5174 = vst [vmem:[#allocation36_spill] sm:$0xff] %v4580_v39  ;;  %v2043_v2 = vmax.f32 %v2041_v33, %v4580_v39  ;;  %v4583_v49 = vpop.f32.mrb[42].mxu0 }
 0x986   : >> { %v2007_v15 = vmax.f32 %v2005_v37, %v4583_v49  ;;  %v4586_v42 = vpop.f32.mrb[43].mxu0 }
 0x987   : >> { %5175 = vst [vmem:[#allocation37_spill] sm:$0xff] %v4586_v42  ;;  %v2044_v52 = vmax.f32 %v2042_v40, %v4586_v42 }
 0x98b   : >> { %v4589_v28 = vpop.f32.mrb[44].mxu0 }
 0x98c   : >> { %v2008_v51 = vmax.f32 %v2006_v38, %v4589_v28  ;;  %v4592_v16 = vpop.f32.mrb[45].mxu0 }
 0x98d   : >> { %5176 = vst [vmem:[#allocation38_spill] sm:$0xff] %v4592_v16  ;;  %v2045_v57 = vmax.f32 %v2043_v2, %v4592_v16  ;;  %v4595_v61 = vpop.f32.mrb[46].mxu0 }
 0x98e   : >> { %5177 = vst [vmem:[#allocation39_spill] sm:$0xff] %v4595_v61  ;;  %v2009_v21 = vmax.f32 %v2007_v15, %v4595_v61  ;;  %v4598_v46 = vpop.f32.mrb[47].mxu0 }
 0x98f   : >> { %5178 = vst [vmem:[#allocation40_spill] sm:$0xff] %v4598_v46  ;;  %v2046_v58 = vmax.f32 %v2044_v52, %v4598_v46 }
 0x993   : >> { %v4601_v10 = vpop.f32.mrb[48].mxu0 }
 0x994   : >> { %5179 = vst [vmem:[#allocation41_spill] sm:$0xff] %v4601_v10  ;;  %v2010_v24 = vmax.f32 %v2008_v51, %v4601_v10  ;;  %v4604_v33 = vpop.f32.mrb[49].mxu0 }
 0x995   : >> { %5180 = vst [vmem:[#allocation42_spill] sm:$0xff] %v4604_v33  ;;  %v2047_v37 = vmax.f32 %v2045_v57, %v4604_v33  ;;  %v4607_v40 = vpop.f32.mrb[50].mxu0 }
 0x996   : >> { %5181 = vst [vmem:[#allocation43_spill] sm:$0xff] %v4607_v40  ;;  %v2011_v38 = vmax.f32 %v2009_v21, %v4607_v40  ;;  %v4610_v2 = vpop.f32.mrb[51].mxu0 }
 0x997   : >> { %5182 = vst [vmem:[#allocation44_spill] sm:$0xff] %v4610_v2  ;;  %v2048_v15 = vmax.f32 %v2046_v58, %v4610_v2 }
 0x99b   : >> { %v4613_v43 = vpop.f32.mrb[52].mxu0 }
 0x99c   : >> { %5183 = vst [vmem:[#allocation45_spill] sm:$0xff] %v4613_v43  ;;  %v2012_v52 = vmax.f32 %v2010_v24, %v4613_v43  ;;  %v4616_v46 = vpop.f32.mrb[53].mxu0 }
 0x99d   : >> { %5184 = vst [vmem:[#allocation46_spill] sm:$0xff] %v4616_v46  ;;  %v2049_v51 = vmax.f32 %v2047_v37, %v4616_v46  ;;  %v4619_v16 = vpop.f32.mrb[54].mxu0 }
 0x99e   : >> { %5185 = vst [vmem:[#allocation47_spill] sm:$0xff] %v4619_v16  ;;  %v2013_v57 = vmax.f32 %v2011_v38, %v4619_v16  ;;  %v4622_v33 = vpop.f32.mrb[55].mxu0  ;;  %v2896_v38 = vcombine.high %v4420_v41, %v4422_v35 }
 0x99f   : >> { %5186 = vst [vmem:[#allocation48_spill] sm:$0xff] %v4622_v33  ;;  %v2050_v21 = vmax.f32 %v2048_v15, %v4622_v33 }
 0x9a0   : >> { %2350 = vmatprep.mubr.bf16.mxu1 %v2896_v38 }
 0x9a3   : >> { %v4625_v42 = vpop.f32.mrb[56].mxu0 }
 0x9a4   : >> { %5187 = vst [vmem:[#allocation49_spill] sm:$0xff] %v4625_v42  ;;  %v2014_v58 = vmax.f32 %v2012_v52, %v4625_v42  ;;  %v4628_v2 = vpop.f32.mrb[57].mxu0 }
 0x9a5   : >> { %5188 = vst [vmem:[#allocation50_spill] sm:$0xff] %v4628_v2  ;;  %v2051_v24 = vmax.f32 %v2049_v51, %v4628_v2  ;;  %v4631_v39 = vpop.f32.mrb[58].mxu0 }
 0x9a6   : >> { %5189 = vst [vmem:[#allocation51_spill] sm:$0xff] %v4631_v39  ;;  %v2015_v37 = vmax.f32 %v2013_v57, %v4631_v39  ;;  %v4634_v46 = vpop.f32.mrb[59].mxu0 }
 0x9a7   : >> { %5190 = vst [vmem:[#allocation52_spill] sm:$0xff] %v4634_v46  ;;  %v2052_v9 = vmax.f32 %v2050_v21, %v4634_v46 }
 0x9ab   : >> { %v4639_v15 = vpop.f32.mrb[60].mxu0 }
 0x9ac   : >> { %5191 = vst [vmem:[#allocation53_spill] sm:$0xff] %v4639_v15  ;;  %v2016_v52 = vmax.f32 %v2014_v58, %v4639_v15  ;;  %v4642_v33 = vpop.f32.mrb[61].mxu0  ;;  %v5210_v15 = vld [vmem:[#allocation50_spill] sm:$0xff] }
 0x9ad   : >> { %v2053_v51 = vmax.f32 %v2051_v24, %v4642_v33  ;;  %v1983_v2 = vpop.f32.mrb[62].mxu0 }
 0x9ae   : >> { %v2017_v30 = vmax.f32 %v2015_v37, %v1983_v2  ;;  %v1985_v59 = vpop.f32.mrb[63].mxu0  ;;  %v5211_v39 = vld [vmem:[#allocation52_spill] sm:$0xff] }
 0x9af   : >> { %v2054_v57 = vmax.f32 %v2052_v9, %v1985_v59  ;;  %v5201_v9 = vld [vmem:[#allocation35_spill] sm:$0xff] }
 0x9b0   : >> { %v2018_v22 = vmax.f32 %v2016_v52, %v2017_v30  ;;  %v5199_v52 = vld [vmem:[#allocation33_spill] sm:$0xff] }
 0x9b1   : >> { %v2055_v60 = vmax.f32 %v2053_v51, %v2054_v57 }
 0x9b2   : >> { %v2019_v29 = vrot.slane %v2018_v22, 4 }
 0x9b3   : >> { %v2056_v53 = vrot.slane %v2055_v60, 4 }
 0x9b4   : >> { %v2020_v41 = vmax.f32 %v2018_v22, %v2019_v29  ;;  %v5202_v22 = vld [vmem:[#allocation36_spill] sm:$0xff]  ;;  %v5206_v29 = vld [vmem:[#allocation42_spill] sm:$0xff] }
 0x9b5   : >> { %v2057_v35 = vmax.f32 %v2055_v60, %v2056_v53  ;;  %v5205_v53 = vld [vmem:[#allocation40_spill] sm:$0xff] }
 0x9b6   : >> { %v2021_v21 = vrot.slane %v2020_v41, 2 }
 0x9b7   : >> { %v2058_v38 = vrot.slane %v2057_v35, 2 }
 0x9b8   : >> { %v2022_v46 = vmax.f32 %v2020_v41, %v2021_v21 }
 0x9b9   : >> { %v2059_v27 = vmax.f32 %v2057_v35, %v2058_v38 }
 0x9ba   : >> { %v2023_v48 = vrot.slane %v2022_v46, 1 }
 0x9bb   : >> { %v2060_v18 = vrot.slane %v2059_v27, 1 }
 0x9bc   : >> { %v4645_v58 = vmax.f32 %v2022_v46, %v2023_v48  ;;  %v5203_v48 = vld [vmem:[#allocation37_spill] sm:$0xff] }
 0x9be   : >> { %v2124_v24 = vsub.f32 %v1983_v2, %v4645_v58  ;;  %v4682_v2 = vmax.f32 %v2059_v27, %v2060_v18  ;;  %v5212_v16 = vsub.f32 %v4457_v54, %v4645_v58  ;;  %v5213_v40 = vsub.f32 %v4461_v56, %v4645_v58 }
 0x9bf   : >> { %v5214_v10 = vsub.f32 %v4465_v63, %v4645_v58  ;;  %v5215_v60 = vsub.f32 %v4473_v0, %v4645_v58  ;;  %v5217_v54 = vsub.f32 %v4487_v32, %v4645_v58  ;;  %v5218_v56 = vsub.f32 %v4493_v20, %v4645_v58 }
 0x9c0   : >> { %v2125_v27 = vsub.f32 %v1985_v59, %v4682_v2  ;;  %v2063_v57 = vsub.f32 %v4459_v44, %v4682_v2  ;;  %v2065_v41 = vsub.f32 %v4463_v62, %v4682_v2  ;;  %v2067_v35 = vsub.f32 %v4469_v45, %v4682_v2  ;;  %v5196_v44 = vld [vmem:[#allocation30_spill] sm:$0xff]  ;;  %v5197_v62 = vld [vmem:[#allocation31_spill] sm:$0xff]  ;;  %v5198_v45 = vld [vmem:[#allocation32_spill] sm:$0xff] }
 0x9c1   : >> { %v2069_v21 = vsub.f32 %v4477_v3, %v4682_v2  ;;  %v2071_v38 = vsub.f32 %v4484_v8, %v4682_v2  ;;  %v2250_v51 = vmul.f32 1.442695, %v2124_v24  ;;  %v2073_v18 = vsub.f32 %v4490_v11, %v4682_v2  ;;  %v5192_v3 = vld [vmem:[#allocation26_spill] sm:$0xff]  ;;  %v5193_v8 = vld [vmem:[#allocation27_spill] sm:$0xff]  ;;  %v5194_v11 = vld [vmem:[#allocation28_spill] sm:$0xff] }
 0x9c2   : >> { %v2075_v59 = vsub.f32 %v4496_v23, %v4682_v2  ;;  %v2252_v46 = vmul.f32 1.442695, %v2125_v27  ;;  %v5195_v23 = vld [vmem:[#allocation29_spill] sm:$0xff]  ;;  %v5200_v27 = vld [vmem:[#allocation34_spill] sm:$0xff]  ;;  %v5207_v24 = vld [vmem:[#allocation44_spill] sm:$0xff] }
 0x9c3   : >> { %3285 = vpow2.f32 %v2250_v51  ;;  %v2126_v43 = vmul.f32 1.442695, %v5212_v16  ;;  %v2130_v30 = vmul.f32 1.442695, %v5213_v40  ;;  %v2134_v37 = vmul.f32 1.442695, %v5214_v10 }
 0x9c4   : >> { %3287 = vpow2.f32 %v2252_v46  ;;  %v2138_v61 = vmul.f32 1.442695, %v5215_v60  ;;  %v5216_v51 = vsub.f32 %v4481_v4, %v4645_v58  ;;  %v2146_v16 = vmul.f32 1.442695, %v5217_v54 }
 0x9c5   : >> { %3289 = vpow2.f32 %v2126_v43  ;;  %v2150_v63 = vmul.f32 1.442695, %v5218_v56  ;;  %v5219_v10 = vsub.f32 %v4499_v31, %v4645_v58  ;;  %v5220_v4 = vsub.f32 %v4505_v36, %v4645_v58 }
 0x9c6   : >> { %v2142_v42 = vmul.f32 1.442695, %v5216_v51  ;;  %3291 = vpow2.f32 %v2130_v30  ;;  %v5221_v43 = vsub.f32 %v4511_v34, %v4645_v58  ;;  %v2132_v30 = vmul.f32 1.442695, %v2065_v41 }
 0x9c7   : >> { %3293 = vpow2.f32 %v2134_v37  ;;  %v2154_v0 = vmul.f32 1.442695, %v5219_v10  ;;  %v2158_v40 = vmul.f32 1.442695, %v5220_v4  ;;  %v2128_v37 = vmul.f32 1.442695, %v2063_v57 }
 0x9c8   : >> { %3295 = vpow2.f32 %v2138_v61  ;;  %v2162_v32 = vmul.f32 1.442695, %v5221_v43  ;;  %v2136_v61 = vmul.f32 1.442695, %v2067_v35  ;;  %v2140_v60 = vmul.f32 1.442695, %v2069_v21 }
 0x9c9   : >> { %3297 = vpow2.f32 %v2142_v42  ;;  %v2144_v42 = vmul.f32 1.442695, %v2071_v38  ;;  %v2148_v34 = vmul.f32 1.442695, %v2073_v18  ;;  %v2152_v54 = vmul.f32 1.442695, %v2075_v59 }
 0x9ca   : >> { %3299 = vpow2.f32 %v2146_v16  ;;  %v5222_v57 = vsub.f32 %v4502_v5, %v4682_v2  ;;  %v5223_v21 = vsub.f32 %v4508_v7, %v4682_v2  ;;  %v5224_v18 = vsub.f32 %v4514_v25, %v4682_v2 }
 0x9cb   : >> { %3301 = vpow2.f32 %v2150_v63  ;;  %v5225_v5 = vsub.f32 %v4517_v12, %v4645_v58  ;;  %v5226_v7 = vsub.f32 %v5192_v3, %v4682_v2  ;;  %v5227_v25 = vsub.f32 %v4523_v1, %v4645_v58 }
 0x9cc   : >> { %3303 = vpow2.f32 %v2154_v0  ;;  %v2156_v41 = vmul.f32 1.442695, %v5222_v57  ;;  %v2160_v38 = vmul.f32 1.442695, %v5223_v21  ;;  %v2164_v59 = vmul.f32 1.442695, %v5224_v18 }
 0x9cd   : >> { %v4805_v20 = vpop.eup %3285  ;;  %3305 = vpow2.f32 %v2158_v40  ;;  %v2166_v10 = vmul.f32 1.442695, %v5225_v5  ;;  %v2168_v4 = vmul.f32 1.442695, %v5226_v7  ;;  %v2170_v43 = vmul.f32 1.442695, %v5227_v25 }
 0x9ce   : >> { %v4807_v31 = vpop.eup %3287  ;;  %3307 = vpow2.f32 %v2162_v32  ;;  %v5228_v32 = vsub.f32 %v5193_v8, %v4682_v2  ;;  %v5236_v25 = vsub.f32 %v5197_v62, %v4682_v2 }
 0x9cf   : >> { %v3290_v36 = vpop.eup %3289  ;;  %3309 = vpow2.f32 %v2128_v37 }
 0x9d0   : >> { %v3292_v46 = vpop.eup %3291  ;;  %3311 = vpow2.f32 %v2132_v30  ;;  %v2172_v12 = vmul.f32 1.442695, %v5228_v32 }
 0x9d1   : >> { %v4809_v51 = vpop.eup %3293  ;;  %3313 = vpow2.f32 %v2136_v61  ;;  %v2254_v37 = vpack.c.bf16 %v3292_v46, %v3290_v36  ;;  %v5230_v46 = vsub.f32 %v5194_v11, %v4682_v2 }
 0x9d2   : >> { %v4811_v16 = vpop.eup %3295  ;;  %3315 = vpow2.f32 %v2140_v60 }
 0x9d3   : >> { %v4816_v35 = vpop.eup %3297  ;;  %3317 = vpow2.f32 %v2144_v42  ;;  %v2256_v61 = vpack.c.bf16 %v4811_v16, %v4809_v51  ;;  %v5229_v42 = vsub.f32 %v4529_v14, %v4645_v58  ;;  %v2176_v51 = vmul.f32 1.442695, %v5230_v46 }
 0x9d4   : >> { %v4821_v56 = vpop.eup %3299  ;;  %3319 = vpow2.f32 %v2148_v34  ;;  %v5231_v16 = vsub.f32 %v4535_v47, %v4645_v58  ;;  %v5232_v14 = vsub.f32 %v5195_v23, %v4682_v2  ;;  %v5234_v47 = vsub.f32 %v5196_v44, %v4682_v2 }
 0x9d5   : >> { %v4826_v63 = vpop.eup %3301  ;;  %3321 = vpow2.f32 %v2152_v54  ;;  %v2258_v3 = vpack.c.bf16 %v4821_v56, %v4816_v35  ;;  %v2174_v34 = vmul.f32 1.442695, %v5229_v42  ;;  %v5233_v56 = vsub.f32 %v4541_v50, %v4645_v58 }
 0x9d6   : >> { %v4831_v0 = vpop.eup %3303  ;;  %3323 = vpow2.f32 %v2156_v41  ;;  %v2178_v57 = vmul.f32 1.442695, %v5231_v16  ;;  %v2180_v21 = vmul.f32 1.442695, %v5232_v14  ;;  %v2184_v5 = vmul.f32 1.442695, %v5234_v47 }
 0x9d7   : >> { %v4836_v40 = vpop.eup %3305  ;;  %3325 = vpow2.f32 %v2160_v38  ;;  %v2260_v60 = vpack.c.bf16 %v4831_v0, %v4826_v63  ;;  %v2182_v18 = vmul.f32 1.442695, %v5233_v56  ;;  %v5235_v23 = vsub.f32 %v4547_v17, %v4645_v58 }
 0x9d8   : >> { %v4844_v30 = vpop.eup %3307  ;;  %3327 = vpow2.f32 %v2164_v59  ;;  %v5237_v44 = vsub.f32 %v4553_v19, %v4645_v58  ;;  %v5238_v17 = vsub.f32 %v5198_v45, %v4682_v2  ;;  %v5240_v19 = vsub.f32 %v5199_v52, %v4682_v2 }
 0x9d9   : >> { %v3310_v1 = vpop.eup %3309  ;;  %3329 = vpow2.f32 %v2166_v10  ;;  %v2262_v8 = vpack.c.bf16 %v4844_v30, %v4836_v40  ;;  %v2186_v7 = vmul.f32 1.442695, %v5235_v23  ;;  %v5241_v45 = vsub.f32 %v4565_v13, %v4645_v58 }
 0x9da   : >> { %v3312_v36 = vpop.eup %3311  ;;  %3331 = vpow2.f32 %v2168_v4  ;;  %v2192_v42 = vmul.f32 1.442695, %v5238_v17  ;;  %v5244_v13 = vsub.f32 %v5201_v9, %v4682_v2  ;;  %v5247_v9 = vsub.f32 %v4583_v49, %v4645_v58 }
 0x9db   : >> { %v3314_v54 = vpop.eup %3313  ;;  %3333 = vpow2.f32 %v2170_v43  ;;  %v2255_v41 = vpack.c.bf16 %v3312_v36, %v3310_v1  ;;  %v2188_v43 = vmul.f32 1.442695, %v5236_v25  ;;  %v5239_v36 = vsub.f32 %v4559_v55, %v4645_v58  ;;  %v5250_v25 = vld [vmem:[#allocation38_spill] sm:$0xff] }
 0x9dc   : >> { %v3316_v35 = vpop.eup %3315  ;;  %3335 = vpow2.f32 %v2172_v12  ;;  %v2190_v12 = vmul.f32 1.442695, %v5237_v44  ;;  %v5242_v55 = vsub.f32 %v5200_v27, %v4682_v2  ;;  %v5245_v27 = vsub.f32 %v4577_v26, %v4645_v58 }
 0x9dd   : >> { %v3318_v38 = vpop.eup %3317  ;;  %3337 = vpow2.f32 %v2174_v34  ;;  %2318 = vmatprep.subr.bf16.mxu1 %v2255_v41  ;;  %v2257_v11 = vpack.c.bf16 %v3316_v35, %v3314_v54  ;;  %v2194_v62 = vmul.f32 1.442695, %v5239_v36  ;;  %v2196_v54 = vmul.f32 1.442695, %v5240_v19  ;;  %v5255_v36 = vld [vmem:[#allocation41_spill] sm:$0xff] }
 0x9de   : >> { %v3320_v59 = vpop.eup %3319  ;;  %3339 = vpow2.f32 %v2176_v51  ;;  %2319 = vmatpush1.bf16.msra.mxu1 %v2254_v37  ;;  %v2200_v41 = vmul.f32 1.442695, %v5242_v55  ;;  %v2210_v23 = vmul.f32 1.442695, %v5247_v9  ;;  %v5249_v63 = vsub.f32 %v4589_v28, %v4645_v58 }
 0x9df   : >> { %v3322_v10 = vpop.eup %3321  ;;  %3341 = vpow2.f32 %v2178_v57  ;;  %2320 = vmatprep.subr.bf16.mxu1 %v2257_v11  ;;  %v2259_v4 = vpack.c.bf16 %v3320_v59, %v3318_v38  ;;  %v2198_v57 = vmul.f32 1.442695, %v5241_v45  ;;  %v5251_v49 = vsub.f32 %v5250_v25, %v4682_v2 }
 0x9e0   : >> { %v3324_v50 = vpop.eup %3323  ;;  %3343 = vpow2.f32 %v2180_v21  ;;  %v5243_v21 = vsub.f32 %v4571_v6, %v4645_v58  ;;  %v5246_v6 = vsub.f32 %v5202_v22, %v4682_v2  ;;  %v2214_v0 = vmul.f32 1.442695, %v5249_v63 }
 0x9e1   : >> { %v3326_v32 = vpop.eup %3325  ;;  %3345 = vpow2.f32 %v2182_v18  ;;  %v2261_v37 = vpack.c.bf16 %v3324_v50, %v3322_v10  ;;  %v2204_v18 = vmul.f32 1.442695, %v5244_v13  ;;  %v5254_v17 = vsub.f32 %v5205_v53, %v4682_v2 }
 0x9e2   : >> { %v3328_v1 = vpop.eup %3327  ;;  %3347 = vpow2.f32 %v2184_v5  ;;  %2321 = vmatpush1.bf16.msra.mxu1 %v2256_v61  ;;  %v2202_v52 = vmul.f32 1.442695, %v5243_v21  ;;  %v2208_v47 = vmul.f32 1.442695, %v5246_v6  ;;  %v5256_v40 = vsub.f32 %v5255_v36, %v4645_v58  ;;  %v5267_v6 = vld [vmem:[#allocation48_spill] sm:$0xff] }
 0x9e3   : >> { %v3330_v34 = vpop.eup %3329  ;;  %3349 = vpow2.f32 %v2186_v7  ;;  %2322 = vmatprep.subr.bf16.mxu1 %v2259_v4  ;;  %v2263_v46 = vpack.c.bf16 %v3328_v1, %v3326_v32  ;;  %v5248_v4 = vsub.f32 %v5203_v48, %v4682_v2  ;;  %v5252_v48 = vld [vmem:[#allocation39_spill] sm:$0xff] }
 0x9e4   : >> { %v3332_v51 = vpop.eup %3331  ;;  %3351 = vpow2.f32 %v2188_v43  ;;  %v2216_v43 = vmul.f32 1.442695, %v5251_v49  ;;  %v2222_v30 = vmul.f32 1.442695, %v5256_v40 }
 0x9e5   : >> { %v3334_v16 = vpop.eup %3333  ;;  %3353 = vpow2.f32 %v2190_v12  ;;  %v2212_v22 = vmul.f32 1.442695, %v5248_v4  ;;  %v5253_v12 = vsub.f32 %v5252_v48, %v4645_v58  ;;  %v5271_v4 = vsub.f32 %v5210_v15, %v4682_v2 }
 0x9e6   : >> { %v3336_v61 = vpop.eup %3335  ;;  %3355 = vpow2.f32 %v2192_v42  ;;  %2323 = vmatpush1.bf16.msra.mxu1 %v2258_v3  ;;  %v2264_v35 = vpack.c.bf16 %v3334_v16, %v3330_v34  ;;  %v2206_v3 = vmul.f32 1.442695, %v5245_v27  ;;  %v2220_v42 = vmul.f32 1.442695, %v5254_v17 }
 0x9e7   : >> { %v3338_v14 = vpop.eup %3337  ;;  %3357 = vpow2.f32 %v2194_v62  ;;  %2324 = vmatprep.subr.bf16.mxu1 %v2261_v37  ;;  %v2265_v38 = vpack.c.bf16 %v3336_v61, %v3332_v51  ;;  %v2218_v37 = vmul.f32 1.442695, %v5253_v12  ;;  %v5257_v62 = vsub.f32 %v5206_v29, %v4682_v2 }
 0x9e8   : >> { %v3340_v56 = vpop.eup %3339  ;;  %3359 = vpow2.f32 %v2196_v54  ;;  %v5258_v54 = vld [vmem:[#allocation43_spill] sm:$0xff]  ;;  %v5260_v61 = vsub.f32 %v5207_v24, %v4682_v2 }
 0x9e9   : >> { %v3342_v11 = vpop.eup %3341  ;;  %3361 = vpow2.f32 %v2198_v57  ;;  %v5259_v16 = vsub.f32 %v5258_v54, %v4645_v58 }
 0x9ea   : >> { %v3344_v59 = vpop.eup %3343  ;;  %3363 = vpow2.f32 %v2200_v41  ;;  %2325 = vmatpush1.bf16.msra.mxu1 %v2260_v60  ;;  %v2266_v5 = vpack.c.bf16 %v3342_v11, %v3338_v14  ;;  %v2228_v55 = vmul.f32 1.442695, %v5260_v61  ;;  %v5261_v14 = vld [vmem:[#allocation45_spill] sm:$0xff]  ;;  %v5265_v11 = vld [vmem:[#allocation47_spill] sm:$0xff] }
 0x9eb   : >> { %v3346_v10 = vpop.eup %3345  ;;  %3365 = vpow2.f32 %v2202_v52  ;;  %2326 = vmatprep.subr.bf16.mxu1 %v2263_v46  ;;  %v2267_v26 = vpack.c.bf16 %v3344_v59, %v3340_v56  ;;  %v2224_v46 = vmul.f32 1.442695, %v5257_v62  ;;  %v2226_v53 = vmul.f32 1.442695, %v5259_v16  ;;  %v5263_v52 = vld [vmem:[#allocation46_spill] sm:$0xff] }
 0x9ec   : >> { %v3348_v7 = vpop.eup %3347  ;;  %3367 = vpow2.f32 %v2204_v18  ;;  %v5262_v29 = vsub.f32 %v5261_v14, %v4645_v58  ;;  %v5266_v27 = vsub.f32 %v5265_v11, %v4645_v58 }
 0x9ed   : >> { %v3350_v50 = vpop.eup %3349  ;;  %3369 = vpow2.f32 %v2206_v3 }
 0x9ee   : >> { %v3352_v60 = vpop.eup %3351  ;;  %3371 = vpow2.f32 %v2208_v47  ;;  %2327 = vmatpush1.bf16.msra.mxu1 %v2262_v8  ;;  %v2268_v32 = vpack.c.bf16 %v3350_v50, %v3346_v10  ;;  %v2234_v24 = vmul.f32 1.442695, %v5266_v27  ;;  %v5268_v47 = vsub.f32 %v5267_v6, %v4682_v2 }
 0x9ef   : >> { %v3354_v44 = vpop.eup %3353  ;;  %3373 = vpow2.f32 %v2210_v23  ;;  %2328 = vmatprep.subr.bf16.mxu1 %v2265_v38  ;;  %v2269_v28 = vpack.c.bf16 %v3352_v60, %v3348_v7  ;;  %v5264_v38 = vsub.f32 %v5263_v52, %v4682_v2  ;;  %v5269_v23 = vld [vmem:[#allocation49_spill] sm:$0xff] }
 0x9f0   : >> { %v3356_v1 = vpop.eup %3355  ;;  %3375 = vpow2.f32 %v2212_v22  ;;  %v2236_v10 = vmul.f32 1.442695, %v5268_v47  ;;  %v2240_v22 = vmul.f32 1.442695, %v5271_v4 }
 0x9f1   : >> { %v3358_v34 = vpop.eup %3357  ;;  %3377 = vpow2.f32 %v2214_v0  ;;  %v2232_v56 = vmul.f32 1.442695, %v5264_v38  ;;  %v5272_v0 = vld [vmem:[#allocation51_spill] sm:$0xff] }
 0x9f2   : >> { %v3360_v8 = vpop.eup %3359  ;;  %3379 = vpow2.f32 %v2216_v43  ;;  %2329 = vmatpush1.bf16.msra.mxu1 %v2264_v35  ;;  %v2270_v51 = vpack.c.bf16 %v3358_v34, %v3354_v44  ;;  %v2230_v35 = vmul.f32 1.442695, %v5262_v29  ;;  %v5273_v60 = vsub.f32 %v5272_v0, %v4645_v58  ;;  %v3419_v38 = vld [vmem:[#allocation4 + $0x10] sm:$0xff] }
 0x9f3   : >> { %v3362_v19 = vpop.eup %3361  ;;  %3381 = vpow2.f32 %v2218_v37  ;;  %2330 = vmatprep.subr.bf16.mxu1 %v2267_v26  ;;  %v2271_v45 = vpack.c.bf16 %v3360_v8, %v3356_v1  ;;  %v5270_v26 = vsub.f32 %v5269_v23, %v4645_v58  ;;  %v5274_v44 = vsub.f32 %v5211_v39, %v4682_v2  ;;  %v5275_v37 = vld [vmem:[#allocation53_spill] sm:$0xff] }
 0x9f4   : >> { %v3364_v57 = vpop.eup %3363  ;;  %3383 = vpow2.f32 %v2220_v42  ;;  %v2242_v25 = vmul.f32 1.442695, %v5273_v60  ;;  %v5276_v15 = vsub.f32 %v5275_v37, %v4645_v58  ;;  %v5277_v1 = vsub.f32 %v4642_v33, %v4682_v2 }
 0x9f5   : >> { %v3366_v41 = vpop.eup %3365  ;;  %3385 = vpow2.f32 %v2222_v30  ;;  %v2244_v48 = vmul.f32 1.442695, %v5274_v44 }
 0x9f6   : >> { %v3368_v21 = vpop.eup %3367  ;;  %3387 = vpow2.f32 %v2224_v46  ;;  %2331 = vmatpush1.bf16.msra.mxu1 %v2266_v5  ;;  %v2272_v13 = vpack.c.bf16 %v3366_v41, %v3362_v19  ;;  %v2238_v5 = vmul.f32 1.442695, %v5270_v26  ;;  %v2248_v17 = vmul.f32 1.442695, %v5277_v1 }
 0x9f7   : >> { %v3370_v18 = vpop.eup %3369  ;;  %3389 = vpow2.f32 %v2226_v53  ;;  %2332 = vmatprep.subr.bf16.mxu1 %v2269_v28  ;;  %v2273_v3 = vpack.c.bf16 %v3368_v21, %v3364_v57  ;;  %v3418_v21 = vld [vmem:[#allocation4 + $0x8] sm:$0xff]  ;;  %v2381_v26 = vlaneseq }
 0x9f8   : >> { %v3372_v59 = vpop.eup %3371  ;;  %3391 = vpow2.f32 %v2228_v55 }
 0x9f9   : >> { %v3374_v9 = vpop.eup %3373  ;;  %3393 = vpow2.f32 %v2230_v35  ;;  %v3417_v35 = vld [vmem:[#allocation4] sm:$0xff] }
 0x9fa   : >> { %v3376_v7 = vpop.eup %3375  ;;  %3395 = vpow2.f32 %v2232_v56  ;;  %2333 = vmatpush1.bf16.msra.mxu1 %v2268_v32  ;;  %v2274_v50 = vpack.c.bf16 %v3374_v9, %v3370_v18  ;;  %v2246_v32 = vmul.f32 1.442695, %v5276_v15  ;;  %v2895_v52 = vcombine.low %v3417_v35, %v3418_v21  ;;  %v3420_v56 = vld [vmem:[#allocation4 + $0x18] sm:$0xff]  ;;  %v2290_v18 = vld [vmem:[#allocation4 + $0x20] sm:$0x11] }
 0x9fb   : >> { %v3378_v63 = vpop.eup %3377  ;;  %3397 = vpow2.f32 %v2234_v24  ;;  %2334 = vmatprep.subr.bf16.mxu1 %v2271_v45  ;;  %v2275_v49 = vpack.c.bf16 %v3376_v7, %v3372_v59  ;;  %v2897_v11 = vcombine.low %v3419_v38, %v3420_v56 }
 0x9fc   : >> { %v3380_v43 = vpop.eup %3379  ;;  %3399 = vpow2.f32 %v2236_v10 }
 0x9fd   : >> { %v3382_v12 = vpop.eup %3381  ;;  %3401 = vpow2.f32 %v2238_v5 }
 0x9fe   : >> { %v3384_v28 = vpop.eup %3383  ;;  %3403 = vpow2.f32 %v2240_v22  ;;  %2335 = vmatpush1.bf16.msra.mxu1 %v2270_v51  ;;  %v2276_v42 = vpack.c.bf16 %v3382_v12, %v3378_v63  ;;  %v2382_v22 = vshrl.u32 %v2381_v26, 7  ;;  %v2591_v26 = vld [vmem:[%s4097_s13 + $0x50] sm:$0xff] (%p1656_p12) }
 0x9ff   : >> { %v3386_v34 = vpop.eup %3385  ;;  %3405 = vpow2.f32 %v2242_v25  ;;  %2336 = vmatprep.subr.bf16.mxu1 %v2273_v3  ;;  %v2277_v36 = vpack.c.bf16 %v3384_v28, %v3380_v43 }
 0xa00   : >> { %v3388_v39 = vpop.eup %3387  ;;  %3407 = vpow2.f32 %v2244_v48 }
 0xa01   : >> { %v3390_v40 = vpop.eup %3389  ;;  %3409 = vpow2.f32 %v2246_v32 }
 0xa02   : >> { %v3392_v30 = vpop.eup %3391  ;;  %3411 = vpow2.f32 %v2248_v17  ;;  %2337 = vmatpush1.bf16.msra.mxu1 %v2272_v13  ;;  %v2278_v58 = vpack.c.bf16 %v3390_v40, %v3386_v34  ;;  %v2898_v13 = vcombine.high %v3419_v38, %v3420_v56  ;;  %v5278_v40 = vmov (%p1656_p12), 0  }
 0xa03   : >> { %v3394_v8 = vpop.eup %3393  ;;  %2338 = vmatprep.subr.bf16.mxu1 %v2275_v49  ;;  %v2279_v62 = vpack.c.bf16 %v3392_v30, %v3388_v39  ;;  %2540 = vmatprep.mubr.bf16.mxu0 (%p1656_p12), %v5278_v40 }
 0xa04   : >> { %v3396_v46 = vpop.eup %3395  ;;  %3422 = vset.pattern.permute.xlu1 (%p1656_p12), %v5278_v40  ;;  %3421 = vset.pattern.permute.xlu0 (%p1656_p12), %v5278_v40 }
 0xa05   : >> { %v3398_v33 = vpop.eup %3397 }
 0xa06   : >> { %v3400_v2 = vpop.eup %3399  ;;  %2339 = vmatpush1.bf16.msra.mxu1 %v2274_v50  ;;  %v2280_v51 = vpack.c.bf16 %v3398_v33, %v3394_v8  ;;  %v2383_v50 = vsub.s32 0, %v2382_v22  ;;  %v2430_v8 = vld [vmem:[#allocation17 + $0x10] sm:$0xff] (%p1656_p12) }
 0xa07   : >> { %v3402_v19 = vpop.eup %3401  ;;  %2340 = vmatprep.subr.bf16.mxu1 %v2277_v36  ;;  %v2281_v54 = vpack.c.bf16 %v3400_v2, %v3396_v46  ;;  %v2428_v46 = vld [vmem:[#allocation17] sm:$0xff] (%p1656_p12)  ;;  %2448 = vperm.xlu1 (%p1656_p12), %3422, %v2430_v8   ;;  %v2431_v2 = vld [vmem:[#allocation17 + $0x18] sm:$0xff] (%p1656_p12)  ;;  %v2594_v8 = vld [vmem:[%s4097_s13 + $0x68] sm:$0xff] (%p1656_p12) }
 0xa08   : >> { %v3404_v16 = vpop.eup %3403  ;;  %2438 = vperm.xlu0 (%p1656_p12), %3421, %v2428_v46  }
 0xa09   : >> { %v3406_v53 = vpop.eup %3405 }
 0xa0a   : >> { %v3408_v45 = vpop.eup %3407  ;;  %2341 = vmatpush1.bf16.msra.mxu1 %v2276_v42  ;;  %v2282_v57 = vpack.c.bf16 %v3406_v53, %v3402_v19  ;;  %v2433_v53 = vld [vmem:[#allocation17 + $0x28] sm:$0xff] (%p1656_p12) }
 0xa0b   : >> { %v3410_v61 = vpop.eup %3409  ;;  %2342 = vmatprep.subr.bf16.mxu1 %v2279_v62  ;;  %v2283_v55 = vpack.c.bf16 %v3408_v45, %v3404_v16  ;;  %2453 = vperm.xlu1 (%p1656_p12), %3422, %v2431_v2   ;;  %v3424_v16 = vld [vmem:[#allocation16 + $0x10] sm:$0xff] (%p1656_p12)   ;;  %v2432_v45 = vld [vmem:[#allocation17 + $0x20] sm:$0xff] (%p1656_p12) }
 0xa0c   : >> { %v3412_v41 = vpop.eup %3411  ;;  %v2284_v14 = vpack.c.bf16 %v4805_v20, %v3410_v61  ;;  %v2900_v20 = vcombine.high %v2290_v18, %v2290_v18  ;;  %v2434_v61 = vld [vmem:[#allocation17 + $0x30] sm:$0xff] (%p1656_p12) }
 0xa0d   : >> { %v2285_v29 = vpack.c.bf16 %v4807_v31, %v3412_v41  ;;  %v2899_v31 = vcombine.low %v2290_v18, %v2290_v18  ;;  %v3426_v41 = vld [vmem:[#allocation16 + $0x18] sm:$0xff] (%p1656_p12)   ;;  %v2587_v2 = vld [vmem:[%s4097_s13 + $0x30] sm:$0xff] (%p1656_p12) }
 0xa0e   : >> { %2343 = vmatpush1.bf16.msra.mxu1 %v2278_v58 }
 0xa0f   : >> { %2344 = vmatprep.subr.bf16.mxu1 %v2281_v54  ;;  %v3423_v54 = vld [vmem:[#allocation16] sm:$0xff] (%p1656_p12)   ;;  %2463 = vperm.xlu1 (%p1656_p12), %3422, %v2433_v53  }
 0xa12   : >> { %2345 = vmatpush1.bf16.msra.mxu1 %v2280_v51  ;;  %v2429_v51 = vld [vmem:[#allocation17 + $0x8] sm:$0xff] (%p1656_p12) }
 0xa13   : >> { %2346 = vmatprep.subr.bf16.mxu1 %v2283_v55  ;;  %2443 = vperm.xlu0 (%p1656_p12), %3421, %v2429_v51   ;;  %v3425_v55 = vld [vmem:[#allocation16 + $0x8] sm:$0xff] (%p1656_p12)  }
 0xa16   : >> { %2347 = vmatpush1.bf16.msra.mxu1 %v2282_v57  ;;  %v2435_v57 = vld [vmem:[#allocation17 + $0x38] sm:$0xff] (%p1656_p12) }
 0xa17   : >> { %2348 = vmatprep.subr.bf16.mxu1 %v2285_v29  ;;  %2458 = vperm.xlu0 (%p1656_p12), %3421, %v2432_v45  }
 0xa18   : > { %2473 = vperm.xlu1 (%p1656_p12), %3422, %v2435_v57  }
 0xa1a   : >> { %2349 = vmatpush1.bf16.msra.mxu1 %v2284_v14 }
 0xa1b   : > { %2468 = vperm.xlu0 (%p1656_p12), %3421, %v2434_v61   ;;  %v2588_v61 = vld [vmem:[%s4097_s13 + $0x38] sm:$0xff] (%p1656_p12) }
 0xa1d   : >> { %2351 = vmatmul.mubr.bf16.vlgmr.msra.gmra.mrb[0].mxu1 %v2895_v52 }
 0xa1e   : >> { %2360 = vmatprep.mubr.bf16.mxu1 %v2898_v13  ;;  %v2581_v13 = vld [vmem:[%s4097_s13] sm:$0xff] (%p1656_p12) }
 0xa25   : >> { %2361 = vmatmul.mubr.bf16.gmra.mrb[4].mxu1 %v2897_v11  ;;  %v2589_v11 = vld [vmem:[%s4097_s13 + $0x40] sm:$0xff] (%p1656_p12) }
 0xa26   : >> { %2370 = vmatprep.mubr.bf16.mxu1 %v2900_v20 }
 0xa2d   : >> { %2371 = vmatmul.mubr.bf16.gmra.mrb[8].mxu1 %v2899_v31 }
 0xa2e   : > { %2560 = vmatprep.mubr.bf16.mxu1 (%p1656_p12), %v5278_v40 }
 0xa86   : > { %v2449_v14 = vpop.permute.xlu1 (%p1656_p12), %2448 }
 0xa87   : > { %v2439_v29 = vpop.permute.xlu0 (%p1656_p12), %2438 }
 0xa8a   : > { %v4990_v35 = vpop.permute.xlu1 (%p1656_p12), %2453 }
 0xa8e   : > { %v2464_v52 = vpop.permute.xlu1 (%p1656_p12), %2463 }
 0xa92   : > { %v2444_v21 = vpop.permute.xlu0 (%p1656_p12), %2443 }
 0xa96   : > { %v2459_v38 = vpop.permute.xlu0 (%p1656_p12), %2458 }
 0xaf0   : >> { %v2352_v27 = vpop.f32.mrb[0].mxu1 }
 0xaf1   : >> { %v2354_v24 = vpop.f32.mrb[1].mxu1 }
 0xaf2   : >> { %v2356_v3 = vpop.f32.mrb[2].mxu1 }
 0xaf3   : >> { %v2358_v59 = vpop.f32.mrb[3].mxu1 }
 0xaf8   : >> { %v2362_v6 = vpop.f32.mrb[4].mxu1 }
 0xaf9   : >> { %v2364_v47 = vpop.f32.mrb[5].mxu1 }
 0xafa   : >> { %v2366_v10 = vpop.f32.mrb[6].mxu1 }
 0xafb   : >> { %v2368_v9 = vpop.f32.mrb[7].mxu1 }
 0xb00   : >> { %v2372_v23 = vpop.f32.mrb[8].mxu1 }
 0xb01   : >> { %3413 = vrcp.f32 %v2372_v23  ;;  %v2374_v5 = vpop.f32.mrb[9].mxu1 }
 0xb02   : >> { %3415 = vrcp.f32 %v2374_v5  ;;  %v2376_v7 = vpop.f32.mrb[10].mxu1 }
 0xb03   : >> { %v2377_v4 = vpop.f32.mrb[11].mxu1 }
 0xb0b   : >> { %v3414_v63 = vpop.eup %3413 }
 0xb0c   : >> { %v3416_v0 = vpop.eup %3415  ;;  %v2384_v60 = vrot.slane %v3414_v63, %v2383_v50  ;;  %v2584_v63 = vld [vmem:[%s4097_s13 + $0x18] sm:$0xff] (%p1656_p12) }
 0xb0d   : >> { %v2388_v25 = vrot.slane %v3416_v0, %v2383_v50  ;;  %1658 = sbr.rel (!%p1656_p12) target bundleno = 2034 (0x7f2), region = 136 }
 0xb0e   : >> { %v2389_v49 = vmul.f32 %v2384_v60, %v2352_v27  ;;  %v2391_v43 = vmul.f32 %v2384_v60, %v2356_v3  ;;  %v2393_v44 = vmul.f32 %v2384_v60, %v2362_v6  ;;  %v2395_v48 = vmul.f32 %v2384_v60, %v2366_v10  ;;  %v2592_v60 = vld [vmem:[%s4097_s13 + $0x58] sm:$0xff] (%p1656_p12) }
 0xb0f   : >> { %v2390_v12 = vmul.f32 %v2388_v25, %v2354_v24  ;;  %v2392_v37 = vmul.f32 %v2388_v25, %v2358_v59  ;;  %v2394_v15 = vmul.f32 %v2388_v25, %v2364_v47  ;;  %v2396_v32 = vmul.f32 %v2388_v25, %v2368_v9  ;;  %v2582_v24 = vld [vmem:[%s4097_s13 + $0x8] sm:$0xff] (%p1656_p12)  ;;  %v2583_v9 = vld [vmem:[%s4097_s13 + $0x10] sm:$0xff] (%p1656_p12) }
 0xb10   : >> { %v2397_v28 = vpack.c.bf16 %v2391_v43, %v2389_v49  ;;  %v2399_v1 = vpack.c.bf16 %v2395_v48, %v2393_v44  ;;  %v2590_v59 = vld [vmem:[%s4097_s13 + $0x48] sm:$0xff] (%p1656_p12) }
 0xb11   : >> { %v2398_v17 = vpack.c.bf16 %v2392_v37, %v2390_v12  ;;  %v2400_v42 = vpack.c.bf16 %v2396_v32, %v2394_v15  ;;  %v2474_v32 = vpop.permute.xlu1 (%p1656_p12), %2473 }
 0xb12   : >> { %2408 = vst [vmem:[%s2407_s20] sm:$0xff] %v2397_v28  ;;  %2410 = vst [vmem:[%s2407_s20 + $0x10] sm:$0xff] %v2399_v1  ;;  %v2469_v28 = vpop.permute.xlu0 (%p1656_p12), %2468 }
 0xb13   : >> { %2409 = vst [vmem:[%s2407_s20 + $0x8] sm:$0xff] %v2398_v17  ;;  %2411 = vst [vmem:[%s2407_s20 + $0x18] sm:$0xff] %v2400_v42  ;;  %v2585_v17 = vld [vmem:[%s4097_s13 + $0x20] sm:$0xff] (%p1656_p12) }
 0xb1a   : > { %v2421_v34 = vld [vmem:[#allocation3 + $0x8] sm:$0xff]  ;;  %v2420_v36 = vld [vmem:[#allocation3] sm:$0xff]  ;;  %v2423_v39 = vld [vmem:[#allocation3 + $0x18] sm:$0xff] }
 0xb1b   : > { %2508 = vmatprep.subr.bf16.mxu0 %v2421_v34  ;;  %3111 = vmatprep.subr.bf16.mxu1 %v2421_v34  ;;  %v2422_v30 = vld [vmem:[#allocation3 + $0x10] sm:$0xff]  ;;  %v2425_v58 = vld [vmem:[#allocation3 + $0x28] sm:$0xff]  ;;  %v2424_v62 = vld [vmem:[#allocation3 + $0x20] sm:$0xff] }
 0xb1c   : > { %2509 = vmatpush1.bf16.msra.mxu0 %v2420_v36  ;;  %3115 = vmatpush1.bf16.msra.mxu1 %v2420_v36  ;;  %v2427_v33 = vld [vmem:[#allocation3 + $0x38] sm:$0xff]  ;;  %v2426_v19 = vld [vmem:[#allocation3 + $0x30] sm:$0xff]  ;;  %v2593_v34 = vld [vmem:[%s4097_s13 + $0x60] sm:$0xff] }
 0xb1d   : > { %2510 = vmatprep.subr.bf16.mxu0 %v2423_v39  ;;  %3112 = vmatprep.subr.bf16.mxu1 %v2423_v39 }
 0xb20   : > { %2511 = vmatpush1.bf16.msra.mxu0 %v2422_v30  ;;  %3116 = vmatpush1.bf16.msra.mxu1 %v2422_v30  ;;  %v2586_v30 = vld [vmem:[%s4097_s13 + $0x28] sm:$0xff] }
 0xb21   : > { %2512 = vmatprep.subr.bf16.mxu0 %v2425_v58  ;;  %3113 = vmatprep.subr.bf16.mxu1 %v2425_v58 }
 0xb24   : > { %2513 = vmatpush1.bf16.msra.mxu0 %v2424_v62  ;;  %3117 = vmatpush1.bf16.msra.mxu1 %v2424_v62 }
 0xb25   : > { %2514 = vmatprep.subr.bf16.mxu0 %v2427_v33  ;;  %3114 = vmatprep.subr.bf16.mxu1 %v2427_v33 }
 0xb28   : > { %2515 = vmatpush1.bf16.msra.mxu0 %v2426_v19  ;;  %3118 = vmatpush1.bf16.msra.mxu1 %v2426_v19  ;;  %v2595_v19 = vld [vmem:[%s4097_s13 + $0x70] sm:$0xff] }
 0xb2b   : > { %2908 = vmatmul.mubr.msk.bf16.vlgmr.msra.gmra.mrb[0].mxu0 %vm472_vm7, %v3423_v54  ;;  %2910 = vmatmul.mubr.msk.bf16.vlgmr.msra.gmra.mrb[0].mxu1 %vm472_vm7, %v3424_v16 }
 0xb2c   : > { %2550 = vmatprep.mubr.bf16.mxu0 %v5278_v40  ;;  %2570 = vmatprep.mubr.bf16.mxu1 %v5278_v40 }
 0xb33   : > { %2909 = vmatmul.mubr.msk.bf16.gmra.mrb[4].mxu0 %vm472_vm7, %v3425_v55  ;;  %2911 = vmatmul.mubr.msk.bf16.gmra.mrb[4].mxu1 %vm472_vm7, %v3426_v41  ;;  %v2596_v41 = vld [vmem:[%s4097_s13 + $0x78] sm:$0xff]  ;;  %s2630_s13 = scalar_lea.sflag [#allocation7], %s4091_s18 }
 0xbfe   : > { %v2542_v56 = vpop.f32.mrb[0].mxu0  ;;  %v2562_v18 = vpop.f32.mrb[0].mxu1 }
 0xbff   : > { %v2543_v20 = vadd.f32 %v2542_v56, %v2439_v29  ;;  %v2563_v31 = vadd.f32 %v2562_v18, %v2459_v38  ;;  %v2544_v27 = vpop.f32.mrb[1].mxu0  ;;  %v2564_v3 = vpop.f32.mrb[1].mxu1 }
 0xc00   : > { %v2545_v6 = vadd.f32 %v2544_v27, %v2439_v29  ;;  %v2565_v47 = vadd.f32 %v2564_v3, %v2459_v38  ;;  %v2546_v10 = vpop.f32.mrb[2].mxu0  ;;  %v2566_v23 = vpop.f32.mrb[2].mxu1 }
 0xc01   : > { %v2597_v5 = vadd.f32 %v2581_v13, %v2543_v20  ;;  %v2605_v7 = vadd.f32 %v2589_v11, %v2563_v31  ;;  %v2547_v4 = vadd.f32 %v2546_v10, %v2444_v21  ;;  %v2567_v22 = vadd.f32 %v2566_v23, %v2464_v52  ;;  %v2548_v50 = vpop.f32.mrb[3].mxu0  ;;  %v2568_v0 = vpop.f32.mrb[3].mxu1 }
 0xc02   : > { %v2598_v25 = vadd.f32 %v2582_v24, %v2545_v6  ;;  %v2606_v49 = vadd.f32 %v2590_v59, %v2565_v47  ;;  %v2549_v43 = vadd.f32 %v2548_v50, %v2444_v21  ;;  %v2569_v44 = vadd.f32 %v2568_v0, %v2464_v52 }
 0xc03   : > { %2613 = vst [vmem:[%s4411_s12] sm:$0xff] %v2597_v5  ;;  %2621 = vst [vmem:[%s4411_s12 + $0x40] sm:$0xff] %v2605_v7  ;;  %v2599_v48 = vadd.f32 %v2583_v9, %v2547_v4  ;;  %v2607_v12 = vadd.f32 %v2591_v26, %v2567_v22 }
 0xc04   : > { %2614 = vst [vmem:[%s4411_s12 + $0x8] sm:$0xff] %v2598_v25  ;;  %2622 = vst [vmem:[%s4411_s12 + $0x48] sm:$0xff] %v2606_v49  ;;  %v2600_v37 = vadd.f32 %v2584_v63, %v2549_v43  ;;  %v2608_v15 = vadd.f32 %v2592_v60, %v2569_v44 }
 0xc05   : > { %2615 = vst [vmem:[%s4411_s12 + $0x10] sm:$0xff] %v2599_v48  ;;  %2623 = vst [vmem:[%s4411_s12 + $0x50] sm:$0xff] %v2607_v12 }
 0xc06   : > { %2616 = vst [vmem:[%s4411_s12 + $0x18] sm:$0xff] %v2600_v37  ;;  %2624 = vst [vmem:[%s4411_s12 + $0x58] sm:$0xff] %v2608_v15  ;;  %v2552_v1 = vpop.f32.mrb[4].mxu0  ;;  %v2572_v42 = vpop.f32.mrb[4].mxu1 }
 0xc07   : > { %v2553_v36 = vadd.f32 %v2552_v1, %v2449_v14  ;;  %v2573_v39 = vadd.f32 %v2572_v42, %v2469_v28  ;;  %v2554_v40 = vpop.f32.mrb[5].mxu0  ;;  %v2574_v58 = vpop.f32.mrb[5].mxu1 }
 0xc08   : > { %v2555_v62 = vadd.f32 %v2554_v40, %v2449_v14  ;;  %v2575_v46 = vadd.f32 %v2574_v58, %v2469_v28  ;;  %v2556_v33 = vpop.f32.mrb[6].mxu0  ;;  %v2576_v51 = vpop.f32.mrb[6].mxu1 }
 0xc09   : > { %v2601_v54 = vadd.f32 %v2585_v17, %v2553_v36  ;;  %v2609_v16 = vadd.f32 %v2593_v34, %v2573_v39  ;;  %v2557_v53 = vadd.f32 %v2556_v33, %v4990_v35  ;;  %v2577_v45 = vadd.f32 %v2576_v51, %v2474_v32  ;;  %v2558_v57 = vpop.f32.mrb[7].mxu0  ;;  %v2578_v55 = vpop.f32.mrb[7].mxu1 }
 0xc0a   : > { %v2602_v14 = vadd.f32 %v2586_v30, %v2555_v62  ;;  %v2610_v29 = vadd.f32 %v2594_v8, %v2575_v46  ;;  %v2559_v21 = vadd.f32 %v2558_v57, %v4990_v35  ;;  %v2579_v52 = vadd.f32 %v2578_v55, %v2474_v32 }
 0xc0b   : > { %2617 = vst [vmem:[%s4411_s12 + $0x20] sm:$0xff] %v2601_v54  ;;  %2625 = vst [vmem:[%s4411_s12 + $0x60] sm:$0xff] %v2609_v16  ;;  %v2603_v38 = vadd.f32 %v2587_v2, %v2557_v53  ;;  %v2611_v56 = vadd.f32 %v2595_v19, %v2577_v45 }
 0xc0c   : > { %2618 = vst [vmem:[%s4411_s12 + $0x28] sm:$0xff] %v2602_v14  ;;  %2626 = vst [vmem:[%s4411_s12 + $0x68] sm:$0xff] %v2610_v29  ;;  %v2604_v35 = vadd.f32 %v2588_v61, %v2559_v21  ;;  %v2612_v13 = vadd.f32 %v2596_v41, %v2579_v52 }
 0xc0d   : > { %2619 = vst [vmem:[%s4411_s12 + $0x30] sm:$0xff] %v2603_v38  ;;  %2627 = vst [vmem:[%s4411_s12 + $0x70] sm:$0xff] %v2611_v56 }
 0xc0e   : > { %2620 = vst [vmem:[%s4411_s12 + $0x38] sm:$0xff] %v2604_v35  ;;  %2628 = vst [vmem:[%s4411_s12 + $0x78] sm:$0xff] %v2612_v13 }
 0xc0f   : > { %3666 = shalt.err (!%p3663_p11)
}
 0xc10   : > { %s3667_s12 = scalar_lea.hbm %s5025_s19, 2048  ;;  %s3671_s14 = scalar_lea.hbm %s5085_s8, 4096 }
 0xc11   : > { %p3668_p3 = scmp.ne.s32.totalorder %s5025_s19, %s3667_s12  ;;  %p3672_p7 = scmp.lt.u32.totalorder %s5025_s19, %s5085_s8 }
 0xc12   : > { %p3673_p4 = scmp.lt.u32.totalorder %s3671_s14, %s3667_s12  ;;  %p3675_p1 = scmp.lt.u32.totalorder %s3667_s12, %s5025_s19 }
 0xc13   : > { %p3669_p5 = pnand %p3668_p3, %p5279_p13 }
 0xc14   : > { %p3674_p12 = por %p3673_p4, %p3672_p7 }
 0xc15   : > { %p3670_p9 = pneg %p3669_p5 }
 0xc16   : > { %p3676_p0 = por %p3675_p1, %p3674_p12 }
 0xc18   : > { %p3677_p2 = pnand %p3676_p0, %p3670_p9 }
 0xc1a   : > { %3680 = shalt.err (!%p3677_p2)
}
 0xc1b   : > { %s3762_s11 = smov 256   ;;  %s3763_s26 = smov 16  }
 0xc1c   : > { %3149 = dma.vmem_to_hbm [thread:$0]  (%p5279_p13), %s5027_s10, 2048, %s5025_s19, %s2630_s13, %s3762_s11, %s3762_s11, %s3763_s26  }
 0xc1d PF: > { %s2658_s21 = sand.u32 1, %s3727_s27   ;;  %p5280_p8 = scmp.ne.s32.totalorder %s5153_s16, 0 }
 0xc1e   : > { %p5281_p6 = scmp.ge.s32.totalorder %s3739_s30, 2  ;;  %s2659_s15 = scalar_lea.sflag [#allocation7], %s2658_s21 }
 0xc20   : > { %p3178_p10 = pnand %p5281_p6, %p5280_p8 }
 0xc22   : > { %3722 = dma.done.wait (!%p3178_p10), %s2659_s15, 2048  }
 0xc23   : > { %3724 = vsyncadd (!%p3178_p10), %s2659_s15, 4294965248  ;;  %p25_p11 = scmp.ge.s32.totalorder %s4018_s23, 4   ;;  %s5282_s27 = smov %s3731_s28 }
 0xc24   : > { %s5283_s28 = smov %s3735_s29  ;;  %s5284_s29 = smov %s4030_s1 }
 0xc25   : > { %s5285_s30 = smov %s4018_s23  ;;  %27 = sbr.rel (!%p25_p11) target bundleno = 12 (0xc), region = 147 }
 0xc2c   :  { %2664 = vsyncpa [#allocation6], 1 }
 0xc2d   :  { %2666 = vsyncpa [#allocation6 + $0x1], 1 }
 0xc2e   :  { %2667 = vsyncpa [#allocation9], 1 }
 0xc2f   :  { %2668 = vsyncpa [#allocation12], 1 }
 0xc30   :  { %2669 = vsyncpa [#allocation15], 1 }
 0xc31   :  { %2670 = vsyncpa [#allocation18], 1 }
 0xc32   :  { %2671 = vsyncpa [#allocation7], 1 }
 0xc33   :  { %2673 = vsyncpa [#allocation7 + $0x1], 1 }

</bundles_post_ra>
